<compile_context>
chip_gen: v7x
topology: tpu7x:2x2x1
jax: 0.10.0
libtpu: 0.0.40
codegen_flags: <defaults>
</compile_context>

<pallas_src>
import functools

import jax
import jax.numpy as jnp
import numpy as np
from jax import lax
from jax.experimental import pallas as pl
from jax.experimental.pallas import tpu as pltpu


def _round_up(n, m):
    return ((n + m - 1) // m) * m


# ----------------------------------------------------------------------------
# Kernel
# ----------------------------------------------------------------------------
def _embedding_gather_kernel(idx_ref, table_ref, out_ref):
    """One grid step: gather TILE embedding rows via an MXU-shaped one-hot matmul.

    idx_ref:   (TILE, 1)        int32   -- indices for this tile
    table_ref: (V_pad, D_pad)   float32 -- full padded table, VMEM-resident
                                           (constant block index => fetched once)
    out_ref:   (TILE, D_pad)    float32 -- gathered embeddings (lane-dense)
    """
    v_pad = table_ref.shape[0]
    idx = idx_ref[...]                                               # (TILE, 1)
    col = lax.broadcasted_iota(jnp.int32, (idx.shape[0], v_pad), 1)  # (TILE, V_pad)
    onehot = (idx == col).astype(table_ref.dtype)                    # (TILE, V_pad)
    # Single full-width MXU pass per tile.  Precision pinned so the f32
    # one-hot matmul stays an exact gather on bf16-only MXUs (v7x).
    out_ref[...] = jnp.dot(
        onehot,
        table_ref[...],
        preferred_element_type=jnp.float32,
        precision=lax.Precision.HIGHEST,
    )


# ----------------------------------------------------------------------------
# Wrappers
# ----------------------------------------------------------------------------
def pad_embedding_table(table):
    """Hoisted to model init: zero-pad the (V, D) table to (V_pad, D_pad) ONCE.

    D is padded to 128 lanes (unmasked vst stores), V to a multiple of 128
    (full MXU K dimension).  Done eagerly at init, never per forward call.
    """
    V, D = table.shape
    V_pad = _round_up(V, 128)
    D_pad = _round_up(D, 128)
    return jnp.pad(table.astype(jnp.float32), ((0, V_pad - V), (0, D_pad - D)))


def _gather_rows_padded(idx_flat, table_p, *, max_tile=512):
    """Core gather: idx_flat (N,) int32 -> (N_pad, D_pad) float32 via Pallas."""
    N = int(idx_flat.shape[0])
    V_pad, D_pad = table_p.shape

    # Big, 128-aligned tiles to amortize the ~0.35 us/grid-step pipeline cost,
    # but at least 2 tiles once there are >=256 padded rows so v7x's 2
    # TensorCores both get work on the "parallel" axis.
    N128 = _round_up(N, 128)
    if N128 >= 256:
        tile = min(max_tile, max(128, _round_up(pl.cdiv(N128, 2), 128)))
    else:
        tile = N128
    N_pad = _round_up(N, tile)
    n_tiles = N_pad // tile

    idx = idx_flat.astype(jnp.int32)
    if N_pad != N:
        # Padded lookups gather row 0 and are sliced off by the caller (a valid
        # row index, which also keeps the future DMA-gather path safe).
        idx = jnp.pad(idx, (0, N_pad - N))
    idx = idx.reshape(N_pad, 1)

    # Honest VMEM budget: double-buffered idx/out blocks, table counted twice
    # (default pipeline buffering; drop to 1x if marked pl.Buffered(1)), plus
    # 1 MiB headroom.  No arbitrary floor.
    idx_buf = tile * 128 * 4          # (tile, 1) i32: lane dim pads to 128 in VMEM
    out_buf = tile * D_pad * 4
    tab_buf = V_pad * D_pad * 4
    vmem_limit = 2 * (idx_buf + out_buf) + 2 * tab_buf + (1 << 20)

    return pl.pallas_call(
        _embedding_gather_kernel,
        out_shape=jax.ShapeDtypeStruct((N_pad, D_pad), jnp.float32),
        grid_spec=pltpu.PrefetchScalarGridSpec(
            num_scalar_prefetch=0,
            grid=(n_tiles,),
            in_specs=[
                pl.BlockSpec((tile, 1), lambda i: (i, 0)),       # per-tile indices
                pl.BlockSpec((V_pad, D_pad), lambda i: (0, 0)),  # constant block idx
            ],
            out_specs=pl.BlockSpec((tile, D_pad), lambda i: (i, 0)),
        ),
        compiler_params=pltpu.CompilerParams(
            dimension_semantics=("parallel",),   # shards tiles over v7x's 2 TCs
            vmem_limit_bytes=int(vmem_limit),
        ),
    )(idx, table_p)


@functools.partial(jax.jit,
                   static_argnames=("embedding_dim", "max_tile", "keep_padded_lanes"))
def din_embedding_lookups(batch_user, batch_label, table_p, *,
                          embedding_dim, max_tile=512, keep_padded_lanes=False):
    """All item_embedding lookups of one DIN forward, merged into ONE pallas_call.

    batch_user:  (B, F) int indices
    batch_label: (B, 1) or (B,) int indices
    table_p:     padded table from pad_embedding_table()
    returns (user_emb (B, F, D), label_emb (B, D)); D = 128 (lane-dense) if
    keep_padded_lanes else embedding_dim.
    """
    B, F = batch_user.shape
    idx_user = batch_user.reshape(-1).astype(jnp.int32)     # (B*F,)
    idx_label = batch_label.reshape(-1).astype(jnp.int32)   # (B,)
    n_user = idx_user.shape[0]
    n_label = idx_label.shape[0]

    out = _gather_rows_padded(jnp.concatenate([idx_user, idx_label]),
                              table_p, max_tile=max_tile)

    d = out.shape[1] if keep_padded_lanes else embedding_dim
    user_emb = out[:n_user, :d].reshape(B, F, d)
    label_emb = out[n_user:n_user + n_label, :d]
    return user_emb, label_emb


@functools.partial(jax.jit, static_argnames=("embedding_dim", "max_tile"))
def embedding_forward(x, table_p, *, embedding_dim, max_tile=512):
    """Generic EmbeddingLayer.forward equivalent: x (any shape) -> x.shape + (D,)."""
    orig_shape = tuple(x.shape)
    N = 1
    for s in orig_shape:
        N *= int(s)
    out = _gather_rows_padded(x.reshape(N), table_p, max_tile=max_tile)
    return out[:N, :embedding_dim].reshape(*orig_shape, embedding_dim)


# ----------------------------------------------------------------------------
# Test
# ----------------------------------------------------------------------------
if __name__ == "__main__":
    # DeepInterestNetwork defaults: item_num=100 -> vocab 101 (last row is the
    # padding_idx), item_embedding dim = 96, feature_num = sum(feature_groups).
    item_num = 100
    embedding_dim = 96
    feature_groups = [20, 20, 10, 10, 2, 2, 2, 1, 1, 1]
    feature_num = sum(feature_groups)          # 59
    B = 4
    V = item_num + 1

    key = jax.random.PRNGKey(0)
    k_w, k_u, k_l = jax.random.split(key, 3)

    # Deterministic stand-in for `weight.data.normal_(0.0, 0.0001)`.
    table = jax.random.normal(k_w, (V, embedding_dim), dtype=jnp.float32) * 1e-4
    # Pad ONCE at "model init" (hoisted out of the forward path).
    table_p = pad_embedding_table(table)

    # batch_user may contain the padding index item_num; forward gathers that
    # row like any other (the normal_ init overwrote the zeroed padding row).
    batch_user = jax.random.randint(k_u, (B, feature_num), 0, V, dtype=jnp.int32)
    batch_label = jax.random.randint(k_l, (B, 1), 0, item_num, dtype=jnp.int32)

    # One merged pallas_call for the user + label lookups of a DIN forward.
    user_emb, label_emb = din_embedding_lookups(
        batch_user, batch_label, table_p, embedding_dim=embedding_dim)
    user_emb, label_emb = jax.block_until_ready((user_emb, label_emb))

    # Reference: plain row gather (== PyTorch nn.Embedding forward semantics).
    ref_user = jnp.take(table, batch_user, axis=0)
    ref_label = jnp.take(table, batch_label.reshape(-1), axis=0)
    np.testing.assert_allclose(np.asarray(user_emb), np.asarray(ref_user),
                               rtol=1e-6, atol=5e-7)
    np.testing.assert_allclose(np.asarray(label_emb), np.asarray(ref_label),
                               rtol=1e-6, atol=5e-7)

    # Generic single-tensor wrapper (EmbeddingLayer.forward) still works too.
    single = embedding_forward(batch_user, table_p, embedding_dim=embedding_dim)
    single = jax.block_until_ready(single)
    np.testing.assert_allclose(np.asarray(single), np.asarray(ref_user),
                               rtol=1e-6, atol=5e-7)

    assert user_emb.shape == (B, feature_num, embedding_dim)
    assert label_emb.shape == (B, embedding_dim)
    assert user_emb.dtype == jnp.float32
    print("KERNEL_OK")
</pallas_src>

<mosaic_0001>
module attributes {stable_mosaic.version = 11 : i64} {
  func.func @_embedding_gather_kernel(%arg0: i32, %arg1: memref<256x1xi32, #tpu.memory_space<vmem>>, %arg2: memref<128x128xf32, #tpu.memory_space<vmem>>, %arg3: memref<256x128xf32, #tpu.memory_space<vmem>>) attributes {dimension_semantics = [#tpu.dimension_semantics<parallel>], iteration_bounds = array<i64: 2>, scalar_prefetch = 0 : i64, scratch_operands = 0 : i64, tpu.core_type = #tpu.core_type<tc>, window_params = [{transform_indices = @transform_0, window_bounds = array<i64: 256, 1>}, {pipeline_mode = #tpu.pipeline_mode<synchronous>, transform_indices = @transform_1, window_bounds = array<i64: 128, 128>}, {transform_indices = @transform_2, window_bounds = array<i64: 256, 128>}]} {
    %c0 = arith.constant 0 : index
    %c0_0 = arith.constant 0 : index
    %0 = vector.load %arg1[%c0, %c0_0] : memref<256x1xi32, #tpu.memory_space<vmem>>, vector<256x1xi32>
    %1 = tpu.iota {dimensions = array<i32: 1>} : vector<256x128xi32>
    %2 = vector.broadcast %0 : vector<256x1xi32> to vector<256x128xi32>
    %3 = arith.cmpi eq, %2, %1 : vector<256x128xi32>
    %4 = arith.extui %3 : vector<256x128xi1> to vector<256x128xi32>
    %5 = arith.sitofp %4 : vector<256x128xi32> to vector<256x128xf32>
    %c0_1 = arith.constant 0 : index
    %c0_2 = arith.constant 0 : index
    %6 = vector.load %arg2[%c0_1, %c0_2] : memref<128x128xf32, #tpu.memory_space<vmem>>, vector<128x128xf32>
    %cst = arith.constant dense<0.000000e+00> : vector<256x128xf32>
    %7 = tpu.matmul %5, %6, %cst {dimension_numbers = #tpu.dot_dimension_numbers<[1], [0], [0], [1], [0, 0, 1, 1], [], []>, precision = #tpu.contract_precision<fp32>} : vector<256x128xf32>, vector<128x128xf32>, vector<256x128xf32> -> vector<256x128xf32>
    %c0_3 = arith.constant 0 : index
    %c0_4 = arith.constant 0 : index
    %8 = vector.load %arg3[%c0_3, %c0_4] : memref<256x128xf32, #tpu.memory_space<vmem>>, vector<256x128xf32>
    tpu.vector_store %arg3[%c0_3, %c0_4], %7 {strides = array<i32>} : memref<256x128xf32, #tpu.memory_space<vmem>>, vector<256x128xf32>,
    return
  }
  func.func @transform_0(%arg0: i32) -> (i32, i32) {
    %c0_i32 = arith.constant 0 : i32
    %c0_i32_0 = arith.constant 0 : i32
    return %arg0, %c0_i32 : i32, i32
  }
  func.func @transform_1(%arg0: i32) -> (i32, i32) {
    %c0_i32 = arith.constant 0 : i32
    %c0_i32_0 = arith.constant 0 : i32
    %c0_i32_1 = arith.constant 0 : i32
    return %c0_i32, %c0_i32_0 : i32, i32
  }
  func.func @transform_2(%arg0: i32) -> (i32, i32) {
    %c0_i32 = arith.constant 0 : i32
    %c0_i32_0 = arith.constant 0 : i32
    return %arg0, %c0_i32 : i32, i32
  }
}

</mosaic_0001>

<bundles_post_ra>
// kernel: din_embedding_lookups.1
= control target key start
LH: loop header
LB: loop body
LE: loop exit
PB: predicated region body
PF: predicated region fallthrough
CT: control target
= control target key end

     0   :  { %s3749_s9 = smov 0   ;;  %s5019_s0 = inlined_call_operand.vmem [shape: s32[512,1], index: 0, kind: input, shape index: {}]   ;;  %s5020_s1 = inlined_call_operand.vmem [shape: f32[128,128], index: 1, kind: input, shape index: {}]   ;;  %s5021_s2 = inlined_call_operand.vmem [shape: f32[512,128], index: 2, kind: output, shape index: {}]  }
   0x1 LB: > { %s2451_s10 = sadd.s32 4294967295, %s3729_s9   ;;  %p2455_p0 = scmp.ge.s32.totalorder %s3729_s9, 1  ;;  %s3729_s9 = sphi %s3749_s9, %s12_s9  }
   0x2   : > { %p113_p1 = scmp.lt.s32.totalorder %s3729_s9, 3 }
   0x4   : > { %p114_p2 = pnand %p2455_p0, %p113_p1 }
   0x6   : > { %117 = sbr.rel (%p114_p2) target bundleno = 568 (0x238), region = 28 }
   0xd   : > { %s2456_s11 = sshll.u32 %s2451_s10, 5  ;;  %v3760_v0 = vld [vmem:[%s5020_s1] sm:$0xff]  ;;  %v3765_v1 = vld [vmem:[%s5020_s1 + $0x8] sm:$0xff]  ;;  %v3770_v2 = vld [vmem:[%s5020_s1 + $0x10] sm:$0xff]  ;;  %v3731_v3 = vmov 0  }
   0xe   : > { %3722 = vset.pattern.permute.xlu1 %v3731_v3  ;;  %3721 = vset.pattern.permute.xlu0 %v3731_v3  ;;  %p136_p3 = scmp.lt.s32.totalorder %s2456_s11, 63  ;;  %v390_v4 = vand.u32 4294901760, %v3760_v0  ;;  %v393_v5 = vand.u32 4294901760, %v3765_v1  ;;  %v3777_v6 = vld [vmem:[%s5020_s1 + $0x18] sm:$0xff]  ;;  %v396_v7 = vand.u32 4294901760, %v3770_v2  ;;  %v3783_v8 = vld [vmem:[%s5020_s1 + $0x20] sm:$0xff] }
   0xf   : > { %v399_v9 = vand.u32 4294901760, %v3777_v6  ;;  %v3789_v10 = vld [vmem:[%s5020_s1 + $0x28] sm:$0xff]  ;;  %v402_v12 = vand.u32 4294901760, %v3783_v8  ;;  %v3810_v15 = vld [vmem:[%s5020_s1 + $0x30] sm:$0xff]  ;;  %v3815_v16 = vld [vmem:[%s5020_s1 + $0x38] sm:$0xff] }
  0x10   : > { %s5193_s11 = smov (!%p136_p3, %s2456_s11), 63  ;;  %v3797_v11 = vpack.c.bf16 %v393_v5, %v390_v4  ;;  %v405_v13 = vand.u32 4294901760, %v3789_v10  ;;  %v408_v20 = vand.u32 4294901760, %v3810_v15  ;;  %v411_v21 = vand.u32 4294901760, %v3815_v16  ;;  %v3844_v22 = vld [vmem:[%s5020_s1 + $0x40] sm:$0xff]  ;;  %v3849_v23 = vld [vmem:[%s5020_s1 + $0x48] sm:$0xff] }
  0x11   : > { %v3805_v14 = vpack.c.bf16 %v399_v9, %v396_v7  ;;  %s2457_s28 = sshll.u32 %s5193_s11, 3  ;;  %v414_v27 = vand.u32 4294901760, %v3844_v22  ;;  %v417_v28 = vand.u32 4294901760, %v3849_v23  ;;  %v3868_v29 = vld [vmem:[%s5020_s1 + $0x50] sm:$0xff]  ;;  %v3873_v30 = vld [vmem:[%s5020_s1 + $0x58] sm:$0xff]  ;;  %v3892_v36 = vld [vmem:[%s5020_s1 + $0x60] sm:$0xff]  ;;  %v3930_v47 = vsub.f32 %v3760_v0, %v390_v4 }
  0x12   : > { %3455 = vmatprep.subr.bf16.mxu0 %v3797_v11  ;;  %3359 = vmatprep.subr.bf16.mxu1 %v3797_v11  ;;  %s3825_s3 = scalar_lea.vmem %s5019_s0, %s2457_s28  ;;  %v3837_v19 = vpack.c.bf16 %v405_v13, %v402_v12  ;;  %v3861_v26 = vpack.c.bf16 %v411_v21, %v408_v20  ;;  %v420_v34 = vand.u32 4294901760, %v3868_v29  ;;  %v423_v35 = vand.u32 4294901760, %v3873_v30  ;;  %v3897_v37 = vld [vmem:[%s5020_s1 + $0x68] sm:$0xff]  ;;  %v3916_v43 = vld [vmem:[%s5020_s1 + $0x70] sm:$0xff]  ;;  %v3921_v44 = vld [vmem:[%s5020_s1 + $0x78] sm:$0xff]  ;;  %s4982_s24 = scalar_lea.vmem %s5021_s2, %s2457_s28 }
  0x13   : > { %3457 = vmatpush3.bf16.msra.mxu0 %v3797_v11  ;;  %3361 = vmatpush3.bf16.msra.mxu1 %v3797_v11  ;;  %v149_v17 = vld [vmem:[%s3825_s3 + $0x10] sm:$0xff]  ;;  %v147_v18 = vld [vmem:[%s3825_s3] sm:$0xff]  ;;  %v150_v24 = vld [vmem:[%s3825_s3 + $0x18] sm:$0xff]  ;;  %v3885_v33 = vpack.c.bf16 %v417_v28, %v414_v27  ;;  %v426_v41 = vand.u32 4294901760, %v3892_v36  ;;  %v429_v42 = vand.u32 4294901760, %v3897_v37  ;;  %v3935_v48 = vsub.f32 %v3765_v1, %v393_v5 }
  0x14   : > { %3459 = vmatprep.subr.bf16.mxu0 %v3805_v14  ;;  %3363 = vmatprep.subr.bf16.mxu1 %v3805_v14  ;;  %v148_v25 = vld [vmem:[%s3825_s3 + $0x8] sm:$0xff]  ;;  %v151_v32 = vld [vmem:[%s3825_s3 + $0x20] sm:$0xff]  ;;  %v154_v38 = vld [vmem:[%s3825_s3 + $0x38] sm:$0xff]  ;;  %v3909_v40 = vpack.c.bf16 %v423_v35, %v420_v34  ;;  %v432_v50 = vand.u32 4294901760, %v3916_v43  ;;  %v435_v51 = vand.u32 4294901760, %v3921_v44  ;;  %v793_v52 = vand.u32 4294901760, %v3930_v47 }
  0x15   : > { %188 = vperm.xlu1 %3722, %v149_v17   ;;  %182 = vperm.xlu0 %3721, %v147_v18   ;;  %v152_v31 = vld [vmem:[%s3825_s3 + $0x28] sm:$0xff]  ;;  %v153_v39 = vld [vmem:[%s3825_s3 + $0x30] sm:$0xff]  ;;  %v155_v46 = vld [vmem:[%s3825_s3 + $0x40] sm:$0xff]  ;;  %v3943_v49 = vpack.c.bf16 %v429_v42, %v426_v41  ;;  %v800_v53 = vand.u32 4294901760, %v3935_v48  ;;  %v3970_v63 = vsub.f32 %v3770_v2, %v396_v7  ;;  %v3975_v0 = vsub.f32 %v3777_v6, %v399_v9 }
  0x16   : > { %v156_v45 = vld [vmem:[%s3825_s3 + $0x48] sm:$0xff]  ;;  %v158_v54 = vld [vmem:[%s3825_s3 + $0x58] sm:$0xff]  ;;  %v157_v55 = vld [vmem:[%s3825_s3 + $0x50] sm:$0xff]  ;;  %v794_v56 = vsub.f32 %v3930_v47, %v793_v52  ;;  %v3961_v58 = vpack.c.bf16 %v435_v51, %v432_v50 }
  0x17   : > { %3461 = vmatpush3.bf16.msra.mxu0 %v3805_v14  ;;  %3365 = vmatpush3.bf16.msra.mxu1 %v3805_v14  ;;  %v801_v57 = vsub.f32 %v3935_v48, %v800_v53  ;;  %v160_v61 = vld [vmem:[%s3825_s3 + $0x68] sm:$0xff]  ;;  %v159_v62 = vld [vmem:[%s3825_s3 + $0x60] sm:$0xff]  ;;  %v3981_v3 = vpack.c.bf16 %v800_v53, %v793_v52  ;;  %v807_v4 = vand.u32 4294901760, %v3970_v63  ;;  %v814_v2 = vand.u32 4294901760, %v3975_v0  ;;  %v162_v5 = vld [vmem:[%s3825_s3 + $0x78] sm:$0xff] }
  0x18   : > { %3463 = vmatprep.subr.bf16.mxu0 %v3837_v19  ;;  %3367 = vmatprep.subr.bf16.mxu1 %v3837_v19  ;;  %v795_v59 = vand.u32 4294901760, %v794_v56  ;;  %v161_v7 = vld [vmem:[%s3825_s3 + $0x70] sm:$0xff]  ;;  %v166_v52 = vld [vmem:[%s3825_s3 + $0x98] sm:$0xff]  ;;  %v167_v56 = vld [vmem:[%s3825_s3 + $0xa0] sm:$0xff] }
  0x19   : > { %191 = vperm.xlu1 %3722, %v150_v24   ;;  %185 = vperm.xlu0 %3721, %v148_v25   ;;  %v802_v60 = vand.u32 4294901760, %v801_v57  ;;  %v808_v6 = vsub.f32 %v3970_v63, %v807_v4  ;;  %v815_v9 = vsub.f32 %v3975_v0, %v814_v2  ;;  %v3991_v17 = vpack.c.bf16 %v814_v2, %v807_v4  ;;  %v164_v25 = vld [vmem:[%s3825_s3 + $0x88] sm:$0xff]  ;;  %v165_v53 = vld [vmem:[%s3825_s3 + $0x90] sm:$0xff]  ;;  %v170_v4 = vld [vmem:[%s3825_s3 + $0xb8] sm:$0xff] }
  0x1a   : > { %v169_v2 = vld [vmem:[%s3825_s3 + $0xb0] sm:$0xff] }
  0x1b   : > { %3465 = vmatpush3.bf16.msra.mxu0 %v3837_v19  ;;  %3369 = vmatpush3.bf16.msra.mxu1 %v3837_v19  ;;  %v3979_v1 = vpack.c.bf16 %v802_v60, %v795_v59  ;;  %v809_v18 = vand.u32 4294901760, %v808_v6  ;;  %v816_v24 = vand.u32 4294901760, %v815_v9  ;;  %v4024_v59 = vsub.f32 %v3810_v15, %v408_v20  ;;  %v171_v6 = vld [vmem:[%s3825_s3 + $0xc0] sm:$0xff] }
  0x1c   : > { %3467 = vmatprep.subr.bf16.mxu0 %v3861_v26  ;;  %3371 = vmatprep.subr.bf16.mxu1 %v3861_v26  ;;  %v4029_v60 = vsub.f32 %v3815_v16, %v411_v21 }
  0x1d   : > { %197 = vperm.xlu1 %3722, %v152_v31   ;;  %194 = vperm.xlu0 %3721, %v151_v32   ;;  %v163_v31 = vld [vmem:[%s3825_s3 + $0x80] sm:$0xff]  ;;  %v3997_v32 = vpack.c.bf16 %v816_v24, %v809_v18  ;;  %v848_v18 = vsub.f32 %v3844_v22, %v414_v27  ;;  %v855_v24 = vsub.f32 %v3849_v23, %v417_v28 }
  0x1e   : > { %v862_v23 = vsub.f32 %v3868_v29, %v420_v34  ;;  %v869_v28 = vsub.f32 %v3873_v30, %v423_v35  ;;  %v876_v29 = vsub.f32 %v3892_v36, %v426_v41  ;;  %v883_v30 = vsub.f32 %v3897_v37, %v429_v42 }
  0x1f   : > { %3469 = vmatpush3.bf16.msra.mxu0 %v3861_v26  ;;  %3373 = vmatpush3.bf16.msra.mxu1 %v3861_v26  ;;  %v897_v36 = vsub.f32 %v3921_v44, %v435_v51  ;;  %v4095_v44 = vpack.c.bf16 %v3975_v0, %v3970_v63  ;;  %v4103_v51 = vpack.c.bf16 %v4029_v60, %v4024_v59  ;;  %v5022_v0 = vmov 0.0  }
  0x20   : > { %3471 = vmatprep.subr.bf16.mxu0 %v3885_v33  ;;  %3375 = vmatprep.subr.bf16.mxu1 %v3885_v33  ;;  %v877_v35 = vand.u32 4294901760, %v876_v29 }
  0x21   : > { %203 = vperm.xlu1 %3722, %v154_v38   ;;  %200 = vperm.xlu0 %3721, %v153_v39   ;;  %v4002_v38 = vsub.f32 %v3783_v8, %v402_v12  ;;  %v4007_v39 = vsub.f32 %v3789_v10, %v405_v13  ;;  %v898_v37 = vand.u32 4294901760, %v897_v36 }
  0x23   : > { %3473 = vmatpush3.bf16.msra.mxu0 %v3885_v33  ;;  %3377 = vmatpush3.bf16.msra.mxu1 %v3885_v33 }
  0x24   : > { %3475 = vmatprep.subr.bf16.mxu0 %v3909_v40  ;;  %3379 = vmatprep.subr.bf16.mxu1 %v3909_v40 }
  0x25   : > { %209 = vperm.xlu1 %3722, %v156_v45   ;;  %206 = vperm.xlu0 %3721, %v155_v46   ;;  %v821_v45 = vand.u32 4294901760, %v4002_v38  ;;  %v828_v46 = vand.u32 4294901760, %v4007_v39 }
  0x27   : > { %3477 = vmatpush3.bf16.msra.mxu0 %v3909_v40  ;;  %3381 = vmatpush3.bf16.msra.mxu1 %v3909_v40  ;;  %v829_v8 = vsub.f32 %v4007_v39, %v828_v46  ;;  %v4015_v12 = vpack.c.bf16 %v828_v46, %v821_v45  ;;  %v173_v46 = vld [vmem:[%s3825_s3 + $0xd0] sm:$0xff] }
  0x28   : > { %3479 = vmatprep.subr.bf16.mxu0 %v3943_v49  ;;  %3383 = vmatprep.subr.bf16.mxu1 %v3943_v49 }
  0x29   : > { %215 = vperm.xlu1 %3722, %v158_v54   ;;  %212 = vperm.xlu0 %3721, %v157_v55   ;;  %v822_v54 = vsub.f32 %v4002_v38, %v821_v45  ;;  %v830_v13 = vand.u32 4294901760, %v829_v8  ;;  %v168_v55 = vld [vmem:[%s3825_s3 + $0xa8] sm:$0xff]  ;;  %v174_v45 = vld [vmem:[%s3825_s3 + $0xd8] sm:$0xff] }
  0x2a   : > { %v176_v8 = vld [vmem:[%s3825_s3 + $0xe8] sm:$0xff] }
  0x2b   : > { %3481 = vmatpush3.bf16.msra.mxu0 %v3943_v49  ;;  %3385 = vmatpush3.bf16.msra.mxu1 %v3943_v49  ;;  %v823_v10 = vand.u32 4294901760, %v822_v54 }
  0x2c   : > { %3483 = vmatprep.subr.bf16.mxu0 %v3961_v58  ;;  %3387 = vmatprep.subr.bf16.mxu1 %v3961_v58 }
  0x2d   : > { %221 = vperm.xlu1 %3722, %v160_v61   ;;  %218 = vperm.xlu0 %3721, %v159_v62   ;;  %v4019_v57 = vpack.c.bf16 %v830_v13, %v823_v10  ;;  %v835_v61 = vand.u32 4294901760, %v4024_v59  ;;  %v842_v62 = vand.u32 4294901760, %v4029_v60  ;;  %v175_v10 = vld [vmem:[%s3825_s3 + $0xe0] sm:$0xff] }
  0x2f   : > { %3485 = vmatpush3.bf16.msra.mxu0 %v3961_v58  ;;  %3389 = vmatpush3.bf16.msra.mxu1 %v3961_v58  ;;  %v843_v15 = vsub.f32 %v4029_v60, %v842_v62  ;;  %v4037_v20 = vpack.c.bf16 %v842_v62, %v835_v61  ;;  %v177_v62 = vld [vmem:[%s3825_s3 + $0xf0] sm:$0xff] }
  0x30   : > { %3391 = vmatprep.subr.bf16.mxu1 %v3979_v1  ;;  %3487 = vmatprep.subr.bf16.mxu0 %v3981_v3 }
  0x31   : > { %227 = vperm.xlu1 %3722, %v162_v5   ;;  %224 = vperm.xlu0 %3721, %v161_v7   ;;  %v836_v5 = vsub.f32 %v4024_v59, %v835_v61  ;;  %v844_v21 = vand.u32 4294901760, %v843_v15  ;;  %v172_v7 = vld [vmem:[%s3825_s3 + $0xc8] sm:$0xff]  ;;  %v178_v61 = vld [vmem:[%s3825_s3 + $0xf8] sm:$0xff] }
  0x33   : > { %v837_v16 = vand.u32 4294901760, %v836_v5 }
  0x35   : > { %233 = vperm.xlu1 %3722, %v164_v25   ;;  %230 = vperm.xlu0 %3721, %v163_v31   ;;  %v4041_v9 = vpack.c.bf16 %v844_v21, %v837_v16  ;;  %v849_v25 = vand.u32 4294901760, %v848_v18  ;;  %v856_v31 = vand.u32 4294901760, %v855_v24  ;;  %v884_v21 = vand.u32 4294901760, %v883_v30 }
  0x37   : > { %v4051_v54 = vpack.c.bf16 %v856_v31, %v849_v25 }
  0x39   : > { %239 = vperm.xlu1 %3722, %v166_v52   ;;  %236 = vperm.xlu0 %3721, %v165_v53   ;;  %v850_v52 = vsub.f32 %v848_v18, %v849_v25  ;;  %v857_v53 = vsub.f32 %v855_v24, %v856_v31  ;;  %v4075_v25 = vpack.c.bf16 %v884_v21, %v877_v35 }
  0x3a   : > { %v890_v31 = vsub.f32 %v3916_v43, %v432_v50  ;;  %v4091_v43 = vpack.c.bf16 %v3935_v48, %v3930_v47  ;;  %v4099_v50 = vpack.c.bf16 %v4007_v39, %v4002_v38 }
  0x3b   : > { %v851_v22 = vand.u32 4294901760, %v850_v52  ;;  %v858_v27 = vand.u32 4294901760, %v857_v53  ;;  %v899_v53 = vsub.f32 %v897_v36, %v898_v37 }
  0x3d   : > { %245 = vperm.xlu1 %3722, %v168_v55   ;;  %242 = vperm.xlu0 %3721, %v167_v56   ;;  %v4055_v13 = vpack.c.bf16 %v858_v27, %v851_v22  ;;  %v863_v55 = vand.u32 4294901760, %v862_v23  ;;  %v870_v56 = vand.u32 4294901760, %v869_v28 }
  0x3f   : > { %v4065_v5 = vpack.c.bf16 %v870_v56, %v863_v55 }
  0x41   : > { %251 = vperm.xlu1 %3722, %v170_v4   ;;  %248 = vperm.xlu0 %3721, %v169_v2   ;;  %v864_v4 = vsub.f32 %v862_v23, %v863_v55  ;;  %v871_v2 = vsub.f32 %v869_v28, %v870_v56  ;;  %v4105_v55 = vpack.c.bf16 %v855_v24, %v848_v18 }
  0x42   : > { %v4107_v56 = vpack.c.bf16 %v869_v28, %v862_v23  ;;  %v4137_v23 = vpack.c.bf16 %v897_v36, %v890_v31 }
  0x43   : > { %v865_v15 = vand.u32 4294901760, %v864_v4  ;;  %v872_v16 = vand.u32 4294901760, %v871_v2 }
  0x45   : > { %257 = vperm.xlu1 %3722, %v172_v7   ;;  %254 = vperm.xlu0 %3721, %v171_v6   ;;  %v4073_v34 = vpack.c.bf16 %v872_v16, %v865_v15  ;;  %v878_v7 = vsub.f32 %v876_v29, %v877_v35  ;;  %v885_v6 = vsub.f32 %v883_v30, %v884_v21 }
  0x47   : > { %v879_v41 = vand.u32 4294901760, %v878_v7 }
  0x49   : > { %263 = vperm.xlu1 %3722, %v174_v45   ;;  %260 = vperm.xlu0 %3721, %v173_v46   ;;  %v886_v45 = vand.u32 4294901760, %v885_v6  ;;  %v891_v46 = vand.u32 4294901760, %v890_v31 }
  0x4b   : > { %v4083_v42 = vpack.c.bf16 %v886_v45, %v879_v41  ;;  %v892_v52 = vsub.f32 %v890_v31, %v891_v46  ;;  %v4085_v22 = vpack.c.bf16 %v898_v37, %v891_v46 }
  0x4d   : > { %269 = vperm.xlu1 %3722, %v176_v8   ;;  %266 = vperm.xlu0 %3721, %v175_v10   ;;  %v893_v27 = vand.u32 4294901760, %v892_v52  ;;  %v900_v8 = vand.u32 4294901760, %v899_v53 }
  0x4f   : > { %v4087_v10 = vpack.c.bf16 %v900_v8, %v893_v27 }
  0x51   : > { %275 = vperm.xlu1 %3722, %v178_v61   ;;  %272 = vperm.xlu0 %3721, %v177_v62   ;;  %v179_v61 = vlaneseq  ;;  %v4109_v62 = vpack.c.bf16 %v883_v30, %v876_v29 }
  0x53   : > { %v4111_v47 = vand.u32 127, %v179_v61 }
  0x94   : > { %v4113_v48 = vpop.permute.xlu1 %188  ;;  %v4115_v63 = vpop.permute.xlu0 %182 }
  0x95   : > { %vm279_vm0 = vcmp.eq.s32.totalorder %v4113_v48, %v4111_v47  ;;  %vm277_vm1 = vcmp.eq.s32.totalorder %v4115_v63, %v4111_v47 }
  0x96   : > { %v2462_v38 = vsel %vm279_vm0, 1.0, %v5022_v0  ;;  %v2460_v39 = vsel %vm277_vm1, 1.0, %v5022_v0 }
  0x97   : > { %v4129_v59 = vsub.f32 %v2462_v38, %v2462_v38  ;;  %v4131_v60 = vsub.f32 %v2460_v39, %v2460_v39 }
  0x98   : > { %v4133_v18 = vpop.permute.xlu1 %191  ;;  %v4135_v24 = vpop.permute.xlu0 %185 }
  0x99   : > { %5079 = vst [vmem:[#allocation2_spill] sm:$0xff] %v4129_v59  ;;  %5080 = vst [vmem:[#allocation3_spill] sm:$0xff] %v4131_v60  ;;  %vm280_vm2 = vcmp.eq.s32.totalorder %v4133_v18, %v4111_v47  ;;  %vm278_vm3 = vcmp.eq.s32.totalorder %v4135_v24, %v4111_v47  ;;  %v472_v28 = vand.u32 4294901760, %v4131_v60  ;;  %v492_v15 = vand.u32 4294901760, %v4129_v59 }
  0x9a   : > { %v2463_v4 = vsel %vm280_vm2, 1.0, %v5022_v0  ;;  %v2461_v2 = vsel %vm278_vm3, 1.0, %v5022_v0 }
  0x9b   : > { %v4153_v16 = vsub.f32 %v2463_v4, %v2463_v4  ;;  %v4155_v29 = vsub.f32 %v2461_v2, %v2461_v2  ;;  %3150 = vmatprep.mubr.f32.mxu0 %v472_v28  ;;  %v473_v30 = vsub.f32 %v4131_v60, %v472_v28  ;;  %v493_v45 = vsub.f32 %v4129_v59, %v492_v15 }
  0x9c   : > { %v4158_v35 = vpop.permute.xlu1 %197  ;;  %v4160_v21 = vpop.permute.xlu0 %194 }
  0x9d   : > { %5081 = vst [vmem:[#allocation4_spill] sm:$0xff] %v4153_v16  ;;  %5082 = vst [vmem:[#allocation5_spill] sm:$0xff] %v4155_v29  ;;  %vm282_vm4 = vcmp.eq.s32.totalorder %v4158_v35, %v4111_v47  ;;  %vm281_vm5 = vcmp.eq.s32.totalorder %v4160_v21, %v4111_v47  ;;  %v474_v7 = vand.u32 4294901760, %v473_v30  ;;  %v482_v6 = vand.u32 4294901760, %v4155_v29 }
  0x9e   : > { %v2465_v31 = vsel %vm282_vm4, 1.0, %v5022_v0  ;;  %v2464_v36 = vsel %vm281_vm5, 1.0, %v5022_v0  ;;  %v502_v41 = vand.u32 4294901760, %v4153_v16  ;;  %v494_v28 = vand.u32 4294901760, %v493_v45 }
  0x9f   : > { %v4177_v46 = vsub.f32 %v2465_v31, %v2465_v31  ;;  %v4179_v37 = vsub.f32 %v2464_v36, %v2464_v36  ;;  %2910 = vmatprep.mubr.f32.mxu1 %v474_v7  ;;  %3151 = vmatmul.mubr.f32.vlgmr.msra.gmra.mrb[0].mxu0 %v482_v6  ;;  %v483_v52 = vsub.f32 %v4155_v29, %v482_v6 }
  0xa0   : > { %v4182_v53 = vpop.permute.xlu1 %203  ;;  %3153 = vmatprep.mubr.f32.mxu0 %v492_v15  ;;  %v4184_v27 = vpop.permute.xlu0 %200  ;;  %3489 = vmatpush3.bf16.msra.mxu0 %v3981_v3  ;;  %v503_v8 = vsub.f32 %v4153_v16, %v502_v41 }
  0xa1   : > { %5083 = vst [vmem:[#allocation6_spill] sm:$0xff] %v4177_v46  ;;  %5084 = vst [vmem:[#allocation7_spill] sm:$0xff] %v4179_v37  ;;  %vm284_vm6 = vcmp.eq.s32.totalorder %v4182_v53, %v4111_v47  ;;  %vm283_vm7 = vcmp.eq.s32.totalorder %v4184_v27, %v4111_v47  ;;  %v484_v61 = vand.u32 4294901760, %v483_v52  ;;  %v512_v38 = vand.u32 4294901760, %v4179_v37  ;;  %3491 = vmatprep.subr.bf16.mxu0 %v3991_v17 }
  0xa2   : > { %v2467_v39 = vsel %vm284_vm6, 1.0, %v5022_v0  ;;  %v2466_v3 = vsel %vm283_vm7, 1.0, %v5022_v0  ;;  %v522_v4 = vand.u32 4294901760, %v4177_v46  ;;  %v504_v31 = vand.u32 4294901760, %v503_v8 }
  0xa3   : > { %v4203_v2 = vsub.f32 %v2467_v39, %v2467_v39  ;;  %v4205_v15 = vsub.f32 %v2466_v3, %v2466_v3  ;;  %2911 = vmatmul.mubr.f32.vlgmr.msra.gmra.mrb[0].mxu1 %v484_v61  ;;  %3154 = vmatmul.mubr.f32.gmra.mrb[2].mxu0 %v502_v41  ;;  %v513_v30 = vsub.f32 %v4179_v37, %v512_v38 }
  0xa4   : > { %3393 = vmatpush3.bf16.msra.mxu1 %v3979_v1  ;;  %v4209_v7 = vpop.permute.xlu1 %209  ;;  %2913 = vmatprep.mubr.f32.mxu1 %v494_v28  ;;  %v4211_v6 = vpop.permute.xlu0 %206  ;;  %v523_v36 = vsub.f32 %v4177_v46, %v522_v4 }
  0xa5   : > { %5085 = vst [vmem:[#allocation8_spill] sm:$0xff] %v4203_v2  ;;  %5086 = vst [vmem:[#allocation9_spill] sm:$0xff] %v4205_v15  ;;  %vm5078_vm8 = vcmp.eq.s32.totalorder %v4209_v7, %v4111_v47  ;;  %3156 = vmatprep.mubr.f32.mxu0 %v512_v38  ;;  %vm285_vm9 = vcmp.eq.s32.totalorder %v4211_v6, %v4111_v47  ;;  %v514_v41 = vand.u32 4294901760, %v513_v30  ;;  %v532_v45 = vand.u32 4294901760, %v4205_v15 }
  0xa6   : > { %3395 = vmatprep.subr.bf16.mxu1 %v3997_v32  ;;  %v2469_v1 = vsel %vm5078_vm8, 1.0, %v5022_v0  ;;  %v2468_v52 = vsel %vm285_vm9, 1.0, %v5022_v0  ;;  %v542_v8 = vand.u32 4294901760, %v4203_v2  ;;  %3493 = vmatpush3.bf16.msra.mxu0 %v3991_v17  ;;  %v524_v30 = vand.u32 4294901760, %v523_v36 }
  0xa7   : > { %v4230_v61 = vsub.f32 %v2469_v1, %v2469_v1  ;;  %v4232_v38 = vsub.f32 %v2468_v52, %v2468_v52  ;;  %2914 = vmatmul.mubr.f32.gmra.mrb[2].mxu1 %v504_v31  ;;  %3157 = vmatmul.mubr.f32.gmra.mrb[4].mxu0 %v522_v4  ;;  %v533_v39 = vsub.f32 %v4205_v15, %v532_v45  ;;  %v5089_v31 = vmov 0.0  }
  0xa8   : > { %v4235_v3 = vpop.permute.xlu1 %215  ;;  %2916 = vmatprep.mubr.f32.mxu1 %v514_v41  ;;  %3159 = vmatprep.mubr.f32.mxu0 %v532_v45  ;;  %v4237_v28 = vpop.permute.xlu0 %212  ;;  %v543_v0 = vsub.f32 %v4203_v2, %v542_v8 }
  0xa9   : > { %5087 = vst [vmem:[#allocation10_spill] sm:$0xff] %v4230_v61  ;;  %5088 = vst [vmem:[#allocation11_spill] sm:$0xff] %v4232_v38  ;;  %vm5076_vm10 = vcmp.eq.s32.totalorder %v4235_v3, %v4111_v47  ;;  %vm5074_vm11 = vcmp.eq.s32.totalorder %v4237_v28, %v4111_v47  ;;  %3397 = vmatpush3.bf16.msra.mxu1 %v3997_v32  ;;  %v534_v17 = vand.u32 4294901760, %v533_v39  ;;  %v552_v4 = vand.u32 4294901760, %v4232_v38 }
  0xaa   : > { %3495 = vmatprep.subr.bf16.mxu0 %v4015_v12  ;;  %v2471_v36 = vsel %vm5076_vm10, 1.0, %v5089_v31  ;;  %v2470_v41 = vsel %vm5074_vm11, 1.0, %v5089_v31  ;;  %v562_v45 = vand.u32 4294901760, %v4230_v61  ;;  %3399 = vmatprep.subr.bf16.mxu1 %v4019_v57  ;;  %v544_v15 = vand.u32 4294901760, %v543_v0 }
  0xab   : > { %3497 = vmatpush3.bf16.msra.mxu0 %v4015_v12  ;;  %v4258_v32 = vsub.f32 %v2471_v36, %v2471_v36  ;;  %v4260_v1 = vsub.f32 %v2470_v41, %v2470_v41  ;;  %2917 = vmatmul.mubr.f32.gmra.mrb[4].mxu1 %v524_v30  ;;  %v553_v52 = vsub.f32 %v4232_v38, %v552_v4 }
  0xac   : > { %3160 = vmatmul.mubr.f32.gmra.mrb[6].mxu0 %v542_v8  ;;  %v4263_v39 = vpop.permute.xlu1 %221  ;;  %2919 = vmatprep.mubr.f32.mxu1 %v534_v17  ;;  %v4265_v2 = vpop.permute.xlu0 %218  ;;  %v563_v46 = vsub.f32 %v4230_v61, %v562_v45 }
  0xad   : > { %5090 = vst [vmem:[#allocation12_spill] sm:$0xff] %v4258_v32  ;;  %5091 = vst [vmem:[#allocation13_spill] sm:$0xff] %v4260_v1  ;;  %3162 = vmatprep.mubr.f32.mxu0 %v552_v4  ;;  %vm5077_vm12 = vcmp.eq.s32.totalorder %v4263_v39, %v4111_v47  ;;  %vm5075_vm13 = vcmp.eq.s32.totalorder %v4265_v2, %v4111_v47  ;;  %v554_v12 = vand.u32 4294901760, %v553_v52  ;;  %v572_v8 = vand.u32 4294901760, %v4260_v1 }
  0xae   : > { %3401 = vmatpush3.bf16.msra.mxu1 %v4019_v57  ;;  %3499 = vmatprep.subr.bf16.mxu0 %v4037_v20  ;;  %v2473_v0 = vsel %vm5077_vm12, 1.0, %v5089_v31  ;;  %v2472_v30 = vsel %vm5075_vm13, 1.0, %v5089_v31  ;;  %v582_v17 = vand.u32 4294901760, %v4258_v32  ;;  %v564_v61 = vand.u32 4294901760, %v563_v46 }
  0xaf   : > { %3403 = vmatprep.subr.bf16.mxu1 %v4041_v9  ;;  %3501 = vmatpush3.bf16.msra.mxu0 %v4037_v20  ;;  %v4286_v4 = vsub.f32 %v2473_v0, %v2473_v0  ;;  %v4288_v57 = vsub.f32 %v2472_v30, %v2472_v30  ;;  %v573_v36 = vsub.f32 %v4260_v1, %v572_v8 }
  0xb0   : > { %2920 = vmatmul.mubr.f32.gmra.mrb[6].mxu1 %v544_v15  ;;  %3163 = vmatmul.mubr.f32.gmra.mrb[8].mxu0 %v562_v45  ;;  %v4291_v41 = vpop.permute.xlu1 %227  ;;  %v4293_v52 = vpop.permute.xlu0 %224  ;;  %v583_v38 = vsub.f32 %v4258_v32, %v582_v17 }
  0xb1   : > { %5092 = vst [vmem:[#allocation14_spill] sm:$0xff] %v4286_v4  ;;  %5093 = vst [vmem:[#allocation15_spill] sm:$0xff] %v4288_v57  ;;  %2922 = vmatprep.mubr.f32.mxu1 %v554_v12  ;;  %3165 = vmatprep.mubr.f32.mxu0 %v572_v8  ;;  %vm5031_vm14 = vcmp.eq.s32.totalorder %v4291_v41, %v4111_v47  ;;  %vm5032_vm15 = vcmp.eq.s32.totalorder %v4293_v52, %v4111_v47  ;;  %v574_v20 = vand.u32 4294901760, %v573_v36 }
  0xb2   : > { %v592_v15 = vand.u32 4294901760, %v4288_v57  ;;  %3405 = vmatpush3.bf16.msra.mxu1 %v4041_v9  ;;  %3503 = vmatprep.subr.bf16.mxu0 %v4051_v54  ;;  %v2475_v46 = vsel %vm5031_vm14, 1.0, %v5089_v31  ;;  %v2474_v45 = vsel %vm5032_vm15, 1.0, %v5089_v31  ;;  %v602_v12 = vand.u32 4294901760, %v4286_v4 }
  0xb3   : > { %3407 = vmatprep.subr.bf16.mxu1 %v4055_v13  ;;  %3505 = vmatpush3.bf16.msra.mxu0 %v4051_v54  ;;  %v4314_v8 = vsub.f32 %v2475_v46, %v2475_v46  ;;  %v4316_v9 = vsub.f32 %v2474_v45, %v2474_v45  ;;  %v584_v32 = vand.u32 4294901760, %v583_v38 }
  0xb4   : > { %2923 = vmatmul.mubr.f32.gmra.mrb[8].mxu1 %v564_v61  ;;  %3166 = vmatmul.mubr.f32.gmra.mrb[10].mxu0 %v582_v17  ;;  %v593_v0 = vsub.f32 %v4288_v57, %v592_v15  ;;  %v4319_v30 = vpop.permute.xlu1 %233  ;;  %v4321_v36 = vpop.permute.xlu0 %230  ;;  %v603_v1 = vsub.f32 %v4286_v4, %v602_v12 }
  0xb5   : > { %5094 = vst [vmem:[#allocation16_spill] sm:$0xff] %v4314_v8  ;;  %5095 = vst [vmem:[#allocation17_spill] sm:$0xff] %v4316_v9  ;;  %2925 = vmatprep.mubr.f32.mxu1 %v574_v20  ;;  %3168 = vmatprep.mubr.f32.mxu0 %v592_v15  ;;  %vm5035_vm14 = vcmp.eq.s32.totalorder %v4319_v30, %v4111_v47  ;;  %vm5036_vm15 = vcmp.eq.s32.totalorder %v4321_v36, %v4111_v47  ;;  %v612_v61 = vand.u32 4294901760, %v4316_v9 }
  0xb6   : > { %v594_v54 = vand.u32 4294901760, %v593_v0  ;;  %3409 = vmatpush3.bf16.msra.mxu1 %v4055_v13  ;;  %3507 = vmatprep.subr.bf16.mxu0 %v4065_v5  ;;  %v2477_v38 = vsel %vm5035_vm14, 1.0, %v5089_v31  ;;  %v2476_v17 = vsel %vm5036_vm15, 1.0, %v5089_v31  ;;  %v622_v20 = vand.u32 4294901760, %v4314_v8 }
  0xb7   : > { %3411 = vmatprep.subr.bf16.mxu1 %v4073_v34  ;;  %3509 = vmatpush3.bf16.msra.mxu0 %v4065_v5  ;;  %v4342_v15 = vsub.f32 %v2477_v38, %v2477_v38  ;;  %v4344_v13 = vsub.f32 %v2476_v17, %v2476_v17  ;;  %v613_v46 = vsub.f32 %v4316_v9, %v612_v61  ;;  %v604_v4 = vand.u32 4294901760, %v603_v1 }
  0xb8   : > { %2926 = vmatmul.mubr.f32.gmra.mrb[10].mxu1 %v584_v32  ;;  %3169 = vmatmul.mubr.f32.gmra.mrb[12].mxu0 %v602_v12  ;;  %v4347_v45 = vpop.permute.xlu1 %239  ;;  %v4349_v0 = vpop.permute.xlu0 %236  ;;  %v623_v57 = vsub.f32 %v4314_v8, %v622_v20  ;;  %v5160_v48 = vld [vmem:[#allocation15_spill] sm:$0xff]  ;;  %v5162_v63 = vld [vmem:[#allocation14_spill] sm:$0xff] }
  0xb9   : > { %5096 = vst [vmem:[#allocation18_spill] sm:$0xff] %v4342_v15  ;;  %5097 = vst [vmem:[#allocation19_spill] sm:$0xff] %v4344_v13  ;;  %2928 = vmatprep.mubr.f32.mxu1 %v594_v54  ;;  %3171 = vmatprep.mubr.f32.mxu0 %v612_v61  ;;  %vm5039_vm14 = vcmp.eq.s32.totalorder %v4347_v45, %v4111_v47  ;;  %vm5040_vm15 = vcmp.eq.s32.totalorder %v4349_v0, %v4111_v47  ;;  %v614_v5 = vand.u32 4294901760, %v613_v46 }
  0xba   : > { %v632_v32 = vand.u32 4294901760, %v4344_v13  ;;  %3413 = vmatpush3.bf16.msra.mxu1 %v4073_v34  ;;  %3511 = vmatprep.subr.bf16.mxu0 %v4075_v25  ;;  %v2479_v1 = vsel %vm5039_vm14, 1.0, %v5089_v31  ;;  %v2478_v12 = vsel %vm5040_vm15, 1.0, %v5089_v31  ;;  %v642_v54 = vand.u32 4294901760, %v4342_v15 }
  0xbb   : > { %3415 = vmatprep.subr.bf16.mxu1 %v4083_v42  ;;  %3513 = vmatpush3.bf16.msra.mxu0 %v4075_v25  ;;  %v4370_v61 = vsub.f32 %v2479_v1, %v2479_v1  ;;  %v4372_v34 = vsub.f32 %v2478_v12, %v2478_v12  ;;  %v624_v8 = vand.u32 4294901760, %v623_v57 }
  0xbc   : > { %2929 = vmatmul.mubr.f32.gmra.mrb[12].mxu1 %v604_v4  ;;  %3172 = vmatmul.mubr.f32.gmra.mrb[14].mxu0 %v622_v20  ;;  %v633_v38 = vsub.f32 %v4344_v13, %v632_v32  ;;  %v4375_v17 = vpop.permute.xlu1 %245  ;;  %v4377_v46 = vpop.permute.xlu0 %242  ;;  %v643_v9 = vsub.f32 %v4342_v15, %v642_v54  ;;  %v5164_v18 = vld [vmem:[#allocation17_spill] sm:$0xff]  ;;  %v5166_v24 = vld [vmem:[#allocation16_spill] sm:$0xff] }
  0xbd   : > { %5098 = vst [vmem:[#allocation20_spill] sm:$0xff] %v4370_v61  ;;  %5099 = vst [vmem:[#allocation21_spill] sm:$0xff] %v4372_v34  ;;  %2931 = vmatprep.mubr.f32.mxu1 %v614_v5  ;;  %3174 = vmatprep.mubr.f32.mxu0 %v632_v32  ;;  %vm5043_vm14 = vcmp.eq.s32.totalorder %v4375_v17, %v4111_v47  ;;  %vm5044_vm15 = vcmp.eq.s32.totalorder %v4377_v46, %v4111_v47  ;;  %v652_v4 = vand.u32 4294901760, %v4372_v34 }
  0xbe   : > { %v634_v25 = vand.u32 4294901760, %v633_v38  ;;  %3417 = vmatpush3.bf16.msra.mxu1 %v4083_v42  ;;  %3515 = vmatprep.subr.bf16.mxu0 %v4085_v22  ;;  %v2481_v57 = vsel %vm5043_vm14, 1.0, %v5089_v31  ;;  %v2480_v20 = vsel %vm5044_vm15, 1.0, %v5089_v31  ;;  %v662_v5 = vand.u32 4294901760, %v4370_v61 }
  0xbf   : > { %3419 = vmatprep.subr.bf16.mxu1 %v4087_v10  ;;  %3517 = vmatpush3.bf16.msra.mxu0 %v4085_v22  ;;  %v4398_v32 = vsub.f32 %v2481_v57, %v2481_v57  ;;  %v4400_v42 = vsub.f32 %v2480_v20, %v2480_v20  ;;  %v653_v1 = vsub.f32 %v4372_v34, %v652_v4  ;;  %v644_v15 = vand.u32 4294901760, %v643_v9 }
  0xc0   : > { %2932 = vmatmul.mubr.f32.gmra.mrb[14].mxu1 %v624_v8  ;;  %3175 = vmatmul.mubr.f32.gmra.mrb[16].mxu0 %v642_v54  ;;  %v4403_v12 = vpop.permute.xlu1 %251  ;;  %v4405_v38 = vpop.permute.xlu0 %248  ;;  %v663_v13 = vsub.f32 %v4370_v61, %v662_v5  ;;  %v5170_v35 = vld [vmem:[#allocation18_spill] sm:$0xff] }
  0xc1   : > { %5100 = vst [vmem:[#allocation22_spill] sm:$0xff] %v4398_v32  ;;  %5101 = vst [vmem:[#allocation23_spill] sm:$0xff] %v4400_v42  ;;  %2934 = vmatprep.mubr.f32.mxu1 %v634_v25  ;;  %3177 = vmatprep.mubr.f32.mxu0 %v652_v4  ;;  %vm5047_vm14 = vcmp.eq.s32.totalorder %v4403_v12, %v4111_v47  ;;  %vm5048_vm15 = vcmp.eq.s32.totalorder %v4405_v38, %v4111_v47  ;;  %v654_v22 = vand.u32 4294901760, %v653_v1 }
  0xc2   : > { %v672_v8 = vand.u32 4294901760, %v4400_v42  ;;  %3421 = vmatpush3.bf16.msra.mxu1 %v4087_v10  ;;  %3519 = vmatprep.subr.bf16.mxu0 %v3797_v11  ;;  %v2483_v9 = vsel %vm5047_vm14, 1.0, %v5089_v31  ;;  %v2482_v54 = vsel %vm5048_vm15, 1.0, %v5089_v31  ;;  %v682_v25 = vand.u32 4294901760, %v4398_v32 }
  0xc3   : > { %3423 = vmatprep.subr.bf16.mxu1 %v4091_v43  ;;  %v4425_v4 = vsub.f32 %v2483_v9, %v2483_v9  ;;  %v4427_v57 = vsub.f32 %v2482_v54, %v2482_v54  ;;  %v664_v61 = vand.u32 4294901760, %v663_v13 }
  0xc4   : > { %2935 = vmatmul.mubr.f32.gmra.mrb[16].mxu1 %v644_v15  ;;  %3178 = vmatmul.mubr.f32.gmra.mrb[18].mxu0 %v662_v5  ;;  %v673_v10 = vsub.f32 %v4400_v42, %v672_v8  ;;  %v4430_v20 = vpop.permute.xlu1 %257  ;;  %v4432_v1 = vpop.permute.xlu0 %254  ;;  %v683_v34 = vsub.f32 %v4398_v32, %v682_v25  ;;  %v5172_v21 = vld [vmem:[#allocation21_spill] sm:$0xff]  ;;  %v5174_v53 = vld [vmem:[#allocation20_spill] sm:$0xff] }
  0xc5   : > { %5102 = vst [vmem:[#allocation24_spill] sm:$0xff] %v4425_v4  ;;  %5103 = vst [vmem:[#allocation25_spill] sm:$0xff] %v4427_v57  ;;  %2937 = vmatprep.mubr.f32.mxu1 %v654_v22  ;;  %3180 = vmatprep.mubr.f32.mxu0 %v672_v8  ;;  %vm5053_vm14 = vcmp.eq.s32.totalorder %v4430_v20, %v4111_v47  ;;  %vm5054_vm15 = vcmp.eq.s32.totalorder %v4432_v1, %v4111_v47  ;;  %v692_v15 = vand.u32 4294901760, %v4427_v57 }
  0xc6   : > { %v674_v9 = vand.u32 4294901760, %v673_v10  ;;  %v2485_v5 = vsel %vm5053_vm14, 1.0, %v5089_v31  ;;  %v2484_v13 = vsel %vm5054_vm15, 1.0, %v5089_v31  ;;  %v702_v22 = vand.u32 4294901760, %v4425_v4 }
  0xc7   : > { %v4449_v8 = vsub.f32 %v2485_v5, %v2485_v5  ;;  %v4451_v54 = vsub.f32 %v2484_v13, %v2484_v13  ;;  %v693_v10 = vsub.f32 %v4427_v57, %v692_v15  ;;  %v684_v37 = vand.u32 4294901760, %v683_v34 }
  0xc8   : > { %2938 = vmatmul.mubr.f32.gmra.mrb[18].mxu1 %v664_v61  ;;  %3181 = vmatmul.mubr.f32.gmra.mrb[20].mxu0 %v682_v25  ;;  %v4454_v32 = vpop.permute.xlu1 %263  ;;  %v4456_v42 = vpop.permute.xlu0 %260  ;;  %v703_v16 = vsub.f32 %v4425_v4, %v702_v22  ;;  %v5176_v27 = vld [vmem:[#allocation23_spill] sm:$0xff] }
  0xc9   : > { %5104 = vst [vmem:[#allocation26_spill] sm:$0xff] %v4449_v8  ;;  %5105 = vst [vmem:[#allocation27_spill] sm:$0xff] %v4451_v54  ;;  %2940 = vmatprep.mubr.f32.mxu1 %v674_v9  ;;  %3183 = vmatprep.mubr.f32.mxu0 %v692_v15  ;;  %vm5059_vm14 = vcmp.eq.s32.totalorder %v4454_v32, %v4111_v47  ;;  %vm5060_vm15 = vcmp.eq.s32.totalorder %v4456_v42, %v4111_v47  ;;  %v694_v5 = vand.u32 4294901760, %v693_v10 }
  0xca   : > { %v712_v61 = vand.u32 4294901760, %v4451_v54  ;;  %v2487_v25 = vsel %vm5059_vm14, 1.0, %v5089_v31  ;;  %v2486_v34 = vsel %vm5060_vm15, 1.0, %v5089_v31  ;;  %v722_v9 = vand.u32 4294901760, %v4449_v8 }
  0xcb   : > { %v4473_v15 = vsub.f32 %v2487_v25, %v2487_v25  ;;  %v4475_v13 = vsub.f32 %v2486_v34, %v2486_v34  ;;  %v704_v59 = vand.u32 4294901760, %v703_v16 }
  0xcc   : > { %2941 = vmatmul.mubr.f32.gmra.mrb[20].mxu1 %v684_v37  ;;  %3184 = vmatmul.mubr.f32.gmra.mrb[22].mxu0 %v702_v22  ;;  %v713_v10 = vsub.f32 %v4451_v54, %v712_v61  ;;  %v4478_v4 = vpop.permute.xlu1 %269  ;;  %v4480_v57 = vpop.permute.xlu0 %266  ;;  %v723_v29 = vsub.f32 %v4449_v8, %v722_v9  ;;  %v5182_v6 = vld [vmem:[#allocation24_spill] sm:$0xff] }
  0xcd   : > { %5106 = vst [vmem:[#allocation28_spill] sm:$0xff] %v4473_v15  ;;  %5107 = vst [vmem:[#allocation29_spill] sm:$0xff] %v4475_v13  ;;  %2943 = vmatprep.mubr.f32.mxu1 %v694_v5  ;;  %3186 = vmatprep.mubr.f32.mxu0 %v712_v61  ;;  %vm5066_vm14 = vcmp.eq.s32.totalorder %v4478_v4, %v4111_v47  ;;  %vm5067_vm15 = vcmp.eq.s32.totalorder %v4480_v57, %v4111_v47  ;;  %v732_v37 = vand.u32 4294901760, %v4475_v13 }
  0xce   : > { %5108 = vst [vmem:[#allocation30_spill] sm:$0xff] %v4478_v4  ;;  %5109 = vst [vmem:[#allocation31_spill] sm:$0xff] %v4480_v57  ;;  %v714_v25 = vand.u32 4294901760, %v713_v10  ;;  %v2489_v22 = vsel %vm5066_vm14, 1.0, %v5089_v31  ;;  %v2488_v16 = vsel %vm5067_vm15, 1.0, %v5089_v31  ;;  %v742_v5 = vand.u32 4294901760, %v4473_v15 }
  0xcf   : > { %v4497_v61 = vsub.f32 %v2489_v22, %v2489_v22  ;;  %v4499_v34 = vsub.f32 %v2488_v16, %v2488_v16  ;;  %v733_v10 = vsub.f32 %v4475_v13, %v732_v37  ;;  %v724_v60 = vand.u32 4294901760, %v723_v29 }
  0xd0   : > { %2944 = vmatmul.mubr.f32.gmra.mrb[22].mxu1 %v704_v59  ;;  %3187 = vmatmul.mubr.f32.gmra.mrb[24].mxu0 %v722_v9  ;;  %v4502_v8 = vpop.permute.xlu1 %275  ;;  %v4504_v54 = vpop.permute.xlu0 %272  ;;  %v743_v4 = vsub.f32 %v4473_v15, %v742_v5 }
  0xd1   : > { %5110 = vst [vmem:[#allocation32_spill] sm:$0xff] %v4502_v8  ;;  %2946 = vmatprep.mubr.f32.mxu1 %v714_v25  ;;  %3189 = vmatprep.mubr.f32.mxu0 %v732_v37  ;;  %vm308_vm14 = vcmp.eq.s32.totalorder %v4502_v8, %v4111_v47  ;;  %vm307_vm15 = vcmp.eq.s32.totalorder %v4504_v54, %v4111_v47  ;;  %v734_v22 = vand.u32 4294901760, %v733_v10  ;;  %v752_v59 = vand.u32 4294901760, %v4499_v34 }
  0xd2   : > { %v2491_v9 = vsel %vm308_vm14, 1.0, %v5089_v31  ;;  %v2490_v29 = vsel %vm307_vm15, 1.0, %v5089_v31  ;;  %v762_v25 = vand.u32 4294901760, %v4497_v61  ;;  %v744_v15 = vand.u32 4294901760, %v743_v4 }
  0xd3   : > { %v4521_v37 = vsub.f32 %v2491_v9, %v2491_v9  ;;  %v4523_v16 = vsub.f32 %v2490_v29, %v2490_v29  ;;  %v753_v10 = vsub.f32 %v4499_v34, %v752_v59  ;;  %v3733_v4 = vmov 1.0  }
  0xd4   : > { %2947 = vmatmul.mubr.f32.gmra.mrb[24].mxu1 %v724_v60  ;;  %3190 = vmatmul.mubr.f32.gmra.mrb[26].mxu0 %v742_v5  ;;  %v763_v57 = vsub.f32 %v4497_v61, %v762_v25 }
  0xd5   : > { %2949 = vmatprep.mubr.f32.mxu1 %v734_v22  ;;  %3192 = vmatprep.mubr.f32.mxu0 %v752_v59  ;;  %v754_v13 = vand.u32 4294901760, %v753_v10  ;;  %v772_v8 = vand.u32 4294901760, %v4523_v16  ;;  %v782_v31 = vand.u32 4294901760, %v4521_v37 }
  0xd6   : > { %v764_v60 = vand.u32 4294901760, %v763_v57 }
  0xd7   : > { %v773_v9 = vsub.f32 %v4523_v16, %v772_v8  ;;  %v783_v29 = vsub.f32 %v4521_v37, %v782_v31 }
  0xd8   : > { %2950 = vmatmul.mubr.f32.gmra.mrb[26].mxu1 %v744_v15  ;;  %3193 = vmatmul.mubr.f32.gmra.mrb[28].mxu0 %v762_v25 }
  0xd9   : > { %2952 = vmatprep.mubr.f32.mxu1 %v754_v13  ;;  %3195 = vmatprep.mubr.f32.mxu0 %v772_v8  ;;  %v774_v5 = vand.u32 4294901760, %v773_v9  ;;  %v784_v22 = vand.u32 4294901760, %v783_v29 }
  0xdc   : > { %2953 = vmatmul.mubr.f32.gmra.mrb[28].mxu1 %v764_v60  ;;  %3196 = vmatmul.mubr.f32.gmra.mrb[30].mxu0 %v782_v31 }
  0xdd   : > { %2955 = vmatprep.mubr.f32.mxu1 %v774_v5  ;;  %3230 = vmatprep.mubr.msk.f32.mxu0 %vm277_vm1, %v3733_v4 }
  0xe0   : > { %2956 = vmatmul.mubr.f32.gmra.mrb[30].mxu1 %v784_v22  ;;  %3231 = vmatmul.mubr.msk.f32.vlgmr.msra.gmra.mrb[0].mxu0 %vm278_vm3, %v3733_v4 }
  0xe1   : > { %2990 = vmatprep.mubr.msk.f32.mxu1 %vm277_vm1, %v3733_v4  ;;  %3233 = vmatprep.mubr.msk.f32.mxu0 %vm279_vm0, %v3733_v4 }
  0xe2   : > { %3521 = vmatpush3.bf16.msra.mxu0 %v3797_v11  ;;  %v5135_v11 = vld [vmem:[#allocation31_spill] sm:$0xff] }
  0xe3   : > { %3523 = vmatprep.subr.bf16.mxu0 %v3805_v14 }
  0xe4   : > { %2991 = vmatmul.mubr.msk.f32.vlgmr.msra.gmra.mrb[0].mxu1 %vm278_vm3, %v3733_v4  ;;  %3234 = vmatmul.mubr.msk.f32.gmra.mrb[2].mxu0 %vm280_vm2, %v3733_v4 }
  0xe5   : > { %3425 = vmatpush3.bf16.msra.mxu1 %v4091_v43  ;;  %2993 = vmatprep.mubr.msk.f32.mxu1 %vm279_vm0, %v3733_v4  ;;  %v5148_v43 = vld [vmem:[#allocation6_spill] sm:$0xff] }
  0xe6   : > { %3236 = vmatprep.mubr.msk.f32.mxu0 %vm281_vm5, %v3733_v4  ;;  %3427 = vmatprep.subr.bf16.mxu1 %v4095_v44 }
  0xe7   : > { %3525 = vmatpush3.bf16.msra.mxu0 %v3805_v14  ;;  %v5138_v14 = vld [vmem:[#allocation30_spill] sm:$0xff] }
  0xe8   : > { %2994 = vmatmul.mubr.msk.f32.gmra.mrb[2].mxu1 %vm280_vm2, %v3733_v4  ;;  %3237 = vmatmul.mubr.msk.f32.gmra.mrb[4].mxu0 %vm282_vm4, %v3733_v4 }
  0xe9   : > { %2996 = vmatprep.mubr.msk.f32.mxu1 %vm281_vm5, %v3733_v4  ;;  %3239 = vmatprep.mubr.msk.f32.mxu0 %vm283_vm7, %v3733_v4 }
  0xea   : > { %3429 = vmatpush3.bf16.msra.mxu1 %v4095_v44  ;;  %3527 = vmatprep.subr.bf16.mxu0 %v3837_v19  ;;  %v5149_v44 = vld [vmem:[#allocation9_spill] sm:$0xff] }
  0xeb   : > { %3431 = vmatprep.subr.bf16.mxu1 %v4099_v50  ;;  %3529 = vmatpush3.bf16.msra.mxu0 %v3837_v19 }
  0xec   : > { %2997 = vmatmul.mubr.msk.f32.gmra.mrb[4].mxu1 %vm282_vm4, %v3733_v4  ;;  %3240 = vmatmul.mubr.msk.f32.gmra.mrb[6].mxu0 %vm284_vm6, %v3733_v4 }
  0xed   : > { %2999 = vmatprep.mubr.msk.f32.mxu1 %vm283_vm7, %v3733_v4  ;;  %3242 = vmatprep.mubr.msk.f32.mxu0 %vm285_vm9, %v3733_v4 }
  0xee   : > { %3433 = vmatpush3.bf16.msra.mxu1 %v4099_v50  ;;  %3531 = vmatprep.subr.bf16.mxu0 %v3861_v26  ;;  %v5150_v50 = vld [vmem:[#allocation8_spill] sm:$0xff] }
  0xef   : > { %3435 = vmatprep.subr.bf16.mxu1 %v4103_v51  ;;  %3533 = vmatpush3.bf16.msra.mxu0 %v3861_v26  ;;  %v5143_v26 = vld [vmem:[#allocation3_spill] sm:$0xff] }
  0xf0   : > { %3000 = vmatmul.mubr.msk.f32.gmra.mrb[6].mxu1 %vm284_vm6, %v3733_v4  ;;  %3243 = vmatmul.mubr.msk.f32.gmra.mrb[8].mxu0 %vm5078_vm8, %v3733_v4 }
  0xf1   : > { %3002 = vmatprep.mubr.msk.f32.mxu1 %vm285_vm9, %v3733_v4  ;;  %3245 = vmatprep.mubr.msk.f32.mxu0 %vm5074_vm11, %v3733_v4 }
  0xf2   : > { %3437 = vmatpush3.bf16.msra.mxu1 %v4103_v51  ;;  %3535 = vmatprep.subr.bf16.mxu0 %v3885_v33  ;;  %v5152_v51 = vld [vmem:[#allocation11_spill] sm:$0xff] }
  0xf3   : > { %3439 = vmatprep.subr.bf16.mxu1 %v4105_v55  ;;  %3537 = vmatpush3.bf16.msra.mxu0 %v3885_v33  ;;  %v5144_v33 = vld [vmem:[#allocation5_spill] sm:$0xff] }
  0xf4   : > { %3003 = vmatmul.mubr.msk.f32.gmra.mrb[8].mxu1 %vm5078_vm8, %v3733_v4  ;;  %3246 = vmatmul.mubr.msk.f32.gmra.mrb[10].mxu0 %vm5076_vm10, %v3733_v4 }
  0xf5   : > { %3005 = vmatprep.mubr.msk.f32.mxu1 %vm5074_vm11, %v3733_v4  ;;  %3248 = vmatprep.mubr.msk.f32.mxu0 %vm5075_vm13, %v3733_v4  ;;  %vm5111_vm11 = vcmp.eq.s32.totalorder %v4293_v52, %v4111_v47 }
  0xf6   : > { %3441 = vmatpush3.bf16.msra.mxu1 %v4105_v55  ;;  %3539 = vmatprep.subr.bf16.mxu0 %v3909_v40  ;;  %v5154_v55 = vld [vmem:[#allocation10_spill] sm:$0xff] }
  0xf7   : > { %3443 = vmatprep.subr.bf16.mxu1 %v4107_v56  ;;  %3541 = vmatpush3.bf16.msra.mxu0 %v3909_v40  ;;  %v5145_v40 = vld [vmem:[#allocation2_spill] sm:$0xff] }
  0xf8   : > { %3006 = vmatmul.mubr.msk.f32.gmra.mrb[10].mxu1 %vm5076_vm10, %v3733_v4  ;;  %3249 = vmatmul.mubr.msk.f32.gmra.mrb[12].mxu0 %vm5077_vm12, %v3733_v4  ;;  %vm5113_vm10 = vcmp.eq.s32.totalorder %v4321_v36, %v4111_v47 }
  0xf9   : > { %3008 = vmatprep.mubr.msk.f32.mxu1 %vm5075_vm13, %v3733_v4  ;;  %3251 = vmatprep.mubr.msk.f32.mxu0 %vm5111_vm11, %v3733_v4  ;;  %vm5112_vm13 = vcmp.eq.s32.totalorder %v4291_v41, %v4111_v47 }
  0xfa   : > { %3445 = vmatpush3.bf16.msra.mxu1 %v4107_v56  ;;  %3543 = vmatprep.subr.bf16.mxu0 %v3943_v49  ;;  %v5156_v56 = vld [vmem:[#allocation13_spill] sm:$0xff] }
  0xfb   : > { %3447 = vmatprep.subr.bf16.mxu1 %v4109_v62  ;;  %3545 = vmatpush3.bf16.msra.mxu0 %v3943_v49  ;;  %v5146_v49 = vld [vmem:[#allocation4_spill] sm:$0xff] }
  0xfc   : > { %3009 = vmatmul.mubr.msk.f32.gmra.mrb[12].mxu1 %vm5077_vm12, %v3733_v4  ;;  %3252 = vmatmul.mubr.msk.f32.gmra.mrb[14].mxu0 %vm5112_vm13, %v3733_v4  ;;  %vm5115_vm12 = vcmp.eq.s32.totalorder %v4349_v0, %v4111_v47 }
  0xfd   : > { %3011 = vmatprep.mubr.msk.f32.mxu1 %vm5111_vm11, %v3733_v4  ;;  %3254 = vmatprep.mubr.msk.f32.mxu0 %vm5113_vm10, %v3733_v4  ;;  %vm5114_vm11 = vcmp.eq.s32.totalorder %v4319_v30, %v4111_v47 }
  0xfe   : > { %3449 = vmatpush3.bf16.msra.mxu1 %v4109_v62  ;;  %3547 = vmatprep.subr.bf16.mxu0 %v3961_v58  ;;  %v5158_v62 = vld [vmem:[#allocation12_spill] sm:$0xff] }
  0xff   : > { %3451 = vmatprep.subr.bf16.mxu1 %v4137_v23  ;;  %3549 = vmatpush3.bf16.msra.mxu0 %v3961_v58  ;;  %v5147_v58 = vld [vmem:[#allocation7_spill] sm:$0xff] }
 0x100   : > { %3012 = vmatmul.mubr.msk.f32.gmra.mrb[14].mxu1 %vm5112_vm13, %v3733_v4  ;;  %3255 = vmatmul.mubr.msk.f32.gmra.mrb[16].mxu0 %vm5114_vm11, %v3733_v4  ;;  %vm5116_vm13 = vmmov %vm5114_vm11  ;;  %vm5117_vm11 = vcmp.eq.s32.totalorder %v4347_v45, %v4111_v47 }
 0x101   : > { %3014 = vmatprep.mubr.msk.f32.mxu1 %vm5113_vm10, %v3733_v4  ;;  %3257 = vmatprep.mubr.msk.f32.mxu0 %vm5115_vm12, %v3733_v4  ;;  %vm5118_vm10 = vmmov %vm5115_vm12  ;;  %vm5119_vm12 = vcmp.eq.s32.totalorder %v4377_v46, %v4111_v47 }
 0x102   : > { %3453 = vmatpush3.bf16.msra.mxu1 %v4137_v23  ;;  %vm5120_vm8 = vmmov %vm5117_vm11  ;;  %v5168_v23 = vld [vmem:[#allocation19_spill] sm:$0xff] }
 0x104   : > { %3015 = vmatmul.mubr.msk.f32.gmra.mrb[16].mxu1 %vm5116_vm13, %v3733_v4  ;;  %3258 = vmatmul.mubr.msk.f32.gmra.mrb[18].mxu0 %vm5117_vm11, %v3733_v4  ;;  %vm5121_vm13 = vcmp.eq.s32.totalorder %v4375_v17, %v4111_v47  ;;  %vm5122_vm11 = vmmov %vm5119_vm12 }
 0x105   : > { %3017 = vmatprep.mubr.msk.f32.mxu1 %vm5118_vm10, %v3733_v4  ;;  %3260 = vmatprep.mubr.msk.f32.mxu0 %vm5119_vm12, %v3733_v4  ;;  %vm5123_vm10 = vcmp.eq.s32.totalorder %v4405_v38, %v4111_v47  ;;  %vm5124_vm12 = vmmov %vm5121_vm13 }
 0x108   : > { %3018 = vmatmul.mubr.msk.f32.gmra.mrb[18].mxu1 %vm5120_vm8, %v3733_v4  ;;  %3261 = vmatmul.mubr.msk.f32.gmra.mrb[20].mxu0 %vm5121_vm13, %v3733_v4  ;;  %vm5125_vm8 = vcmp.eq.s32.totalorder %v4403_v12, %v4111_v47  ;;  %vm5126_vm13 = vmmov %vm5123_vm10 }
 0x109   : > { %3020 = vmatprep.mubr.msk.f32.mxu1 %vm5122_vm11, %v3733_v4  ;;  %3263 = vmatprep.mubr.msk.f32.mxu0 %vm5123_vm10, %v3733_v4  ;;  %vm5127_vm11 = vcmp.eq.s32.totalorder %v4432_v1, %v4111_v47  ;;  %vm5128_vm10 = vmmov %vm5125_vm8 }
 0x10c   : > { %3021 = vmatmul.mubr.msk.f32.gmra.mrb[20].mxu1 %vm5124_vm12, %v3733_v4  ;;  %3264 = vmatmul.mubr.msk.f32.gmra.mrb[22].mxu0 %vm5125_vm8, %v3733_v4  ;;  %vm5129_vm12 = vcmp.eq.s32.totalorder %v4430_v20, %v4111_v47  ;;  %vm5130_vm8 = vmmov %vm5127_vm11 }
 0x10d   : > { %3023 = vmatprep.mubr.msk.f32.mxu1 %vm5126_vm13, %v3733_v4  ;;  %3266 = vmatprep.mubr.msk.f32.mxu0 %vm5127_vm11, %v3733_v4  ;;  %vm5131_vm13 = vcmp.eq.s32.totalorder %v4456_v42, %v4111_v47  ;;  %vm5132_vm11 = vmmov %vm5129_vm12 }
 0x110   : > { %3024 = vmatmul.mubr.msk.f32.gmra.mrb[22].mxu1 %vm5128_vm10, %v3733_v4  ;;  %3267 = vmatmul.mubr.msk.f32.gmra.mrb[24].mxu0 %vm5129_vm12, %v3733_v4  ;;  %vm5133_vm10 = vcmp.eq.s32.totalorder %v4454_v32, %v4111_v47  ;;  %vm5134_vm12 = vmmov %vm5131_vm13 }
 0x111   : > { %3026 = vmatprep.mubr.msk.f32.mxu1 %vm5130_vm8, %v3733_v4  ;;  %3269 = vmatprep.mubr.msk.f32.mxu0 %vm5131_vm13, %v3733_v4  ;;  %vm5136_vm8 = vcmp.eq.s32.totalorder %v5135_v11, %v4111_v47  ;;  %vm5137_vm13 = vmmov %vm5133_vm10 }
 0x114   : > { %3027 = vmatmul.mubr.msk.f32.gmra.mrb[24].mxu1 %vm5132_vm11, %v3733_v4  ;;  %3270 = vmatmul.mubr.msk.f32.gmra.mrb[26].mxu0 %vm5133_vm10, %v3733_v4  ;;  %vm5139_vm11 = vcmp.eq.s32.totalorder %v5138_v14, %v4111_v47  ;;  %vm5140_vm10 = vmmov %vm5136_vm8 }
 0x115   : > { %3029 = vmatprep.mubr.msk.f32.mxu1 %vm5134_vm12, %v3733_v4  ;;  %3272 = vmatprep.mubr.msk.f32.mxu0 %vm5136_vm8, %v3733_v4  ;;  %vm5141_vm12 = vmmov %vm5139_vm11  ;;  %vm5169_vm8 = vcmp.eq.s32.totalorder %v4349_v0, %v4111_v47 }
 0x118   : > { %3030 = vmatmul.mubr.msk.f32.gmra.mrb[26].mxu1 %vm5137_vm13, %v3733_v4  ;;  %3273 = vmatmul.mubr.msk.f32.gmra.mrb[28].mxu0 %vm5139_vm11, %v3733_v4  ;;  %vm5171_vm13 = vcmp.eq.s32.totalorder %v4347_v45, %v4111_v47  ;;  %vm5173_vm11 = vcmp.eq.s32.totalorder %v4377_v46, %v4111_v47 }
 0x119   : > { %3032 = vmatprep.mubr.msk.f32.mxu1 %vm5140_vm10, %v3733_v4  ;;  %3275 = vmatprep.mubr.msk.f32.mxu0 %vm307_vm15, %v3733_v4  ;;  %vm5175_vm10 = vcmp.eq.s32.totalorder %v4375_v17, %v4111_v47 }
 0x11c   : > { %3033 = vmatmul.mubr.msk.f32.gmra.mrb[28].mxu1 %vm5141_vm12, %v3733_v4  ;;  %3276 = vmatmul.mubr.msk.f32.gmra.mrb[30].mxu0 %vm308_vm14, %v3733_v4  ;;  %vm5177_vm12 = vcmp.eq.s32.totalorder %v4405_v38, %v4111_v47 }
 0x11d   : > { %3035 = vmatprep.mubr.msk.f32.mxu1 %vm307_vm15, %v3733_v4  ;;  %3310 = vmatprep.mubr.msk.f32.mxu0 %vm277_vm1, %v3733_v4  ;;  %vm5153_vm1 = vcmp.eq.s32.totalorder %v4237_v28, %v4111_v47  ;;  %v5186_v28 = vld [vmem:[#allocation26_spill] sm:$0xff] }
 0x120   : > { %3036 = vmatmul.mubr.msk.f32.gmra.mrb[30].mxu1 %vm308_vm14, %v3733_v4  ;;  %3311 = vmatmul.mubr.msk.f32.vlgmr.msra.gmra.mrb[0].mxu0 %vm278_vm3, %v3733_v4  ;;  %vm5157_vm3 = vcmp.eq.s32.totalorder %v4265_v2, %v4111_v47  ;;  %v5178_v2 = vld [vmem:[#allocation22_spill] sm:$0xff] }
 0x121   : > { %3070 = vmatprep.mubr.f32.mxu1 %v5143_v26  ;;  %3313 = vmatprep.mubr.msk.f32.mxu0 %vm279_vm0, %v3733_v4  ;;  %vm5151_vm0 = vcmp.eq.s32.totalorder %v4209_v7, %v4111_v47  ;;  %v5180_v7 = vld [vmem:[#allocation25_spill] sm:$0xff] }
 0x124   : > { %3071 = vmatmul.mubr.f32.vlgmr.msra.gmra.mrb[0].mxu1 %v5144_v33  ;;  %3314 = vmatmul.mubr.msk.f32.gmra.mrb[2].mxu0 %vm280_vm2, %v3733_v4  ;;  %vm5155_vm2 = vcmp.eq.s32.totalorder %v4235_v3, %v4111_v47  ;;  %v5184_v3 = vld [vmem:[#allocation27_spill] sm:$0xff] }
 0x125   : > { %3073 = vmatprep.mubr.f32.mxu1 %v5145_v40  ;;  %3316 = vmatprep.mubr.msk.f32.mxu0 %vm281_vm5, %v3733_v4  ;;  %vm5161_vm5 = vcmp.eq.s32.totalorder %v4293_v52, %v4111_v47 }
 0x128   : > { %3074 = vmatmul.mubr.f32.gmra.mrb[2].mxu1 %v5146_v49  ;;  %3317 = vmatmul.mubr.msk.f32.gmra.mrb[4].mxu0 %vm282_vm4, %v3733_v4  ;;  %vm5159_vm4 = vcmp.eq.s32.totalorder %v4263_v39, %v4111_v47  ;;  %v5188_v39 = vld [vmem:[#allocation29_spill] sm:$0xff] }
 0x129   : > { %3076 = vmatprep.mubr.f32.mxu1 %v5147_v58  ;;  %3319 = vmatprep.mubr.msk.f32.mxu0 %vm283_vm7, %v3733_v4  ;;  %vm5165_vm7 = vcmp.eq.s32.totalorder %v4321_v36, %v4111_v47 }
 0x12c   : > { %3077 = vmatmul.mubr.f32.gmra.mrb[4].mxu1 %v5148_v43  ;;  %3320 = vmatmul.mubr.msk.f32.gmra.mrb[6].mxu0 %vm284_vm6, %v3733_v4  ;;  %vm5163_vm6 = vcmp.eq.s32.totalorder %v4291_v41, %v4111_v47  ;;  %v5190_v41 = vld [vmem:[#allocation28_spill] sm:$0xff] }
 0x12d   : > { %3079 = vmatprep.mubr.f32.mxu1 %v5149_v44  ;;  %3322 = vmatprep.mubr.msk.f32.mxu0 %vm285_vm9, %v3733_v4  ;;  %vm5167_vm9 = vcmp.eq.s32.totalorder %v4319_v30, %v4111_v47 }
 0x130   : > { %3080 = vmatmul.mubr.f32.gmra.mrb[6].mxu1 %v5150_v50  ;;  %3323 = vmatmul.mubr.msk.f32.gmra.mrb[8].mxu0 %vm5151_vm0, %v3733_v4  ;;  %vm5179_vm0 = vcmp.eq.s32.totalorder %v4403_v12, %v4111_v47 }
 0x131   : > { %3082 = vmatprep.mubr.f32.mxu1 %v5152_v51  ;;  %3325 = vmatprep.mubr.msk.f32.mxu0 %vm5153_vm1, %v3733_v4  ;;  %vm5181_vm1 = vcmp.eq.s32.totalorder %v4432_v1, %v4111_v47 }
 0x134   : > { %3083 = vmatmul.mubr.f32.gmra.mrb[8].mxu1 %v5154_v55  ;;  %3326 = vmatmul.mubr.msk.f32.gmra.mrb[10].mxu0 %vm5155_vm2, %v3733_v4  ;;  %vm5183_vm2 = vcmp.eq.s32.totalorder %v4430_v20, %v4111_v47 }
 0x135   : > { %3085 = vmatprep.mubr.f32.mxu1 %v5156_v56  ;;  %3328 = vmatprep.mubr.msk.f32.mxu0 %vm5157_vm3, %v3733_v4  ;;  %vm5185_vm3 = vcmp.eq.s32.totalorder %v4456_v42, %v4111_v47 }
 0x138   : > { %3086 = vmatmul.mubr.f32.gmra.mrb[10].mxu1 %v5158_v62  ;;  %3329 = vmatmul.mubr.msk.f32.gmra.mrb[12].mxu0 %vm5159_vm4, %v3733_v4  ;;  %vm5187_vm4 = vcmp.eq.s32.totalorder %v4454_v32, %v4111_v47 }
 0x139   : > { %3088 = vmatprep.mubr.f32.mxu1 %v5160_v48  ;;  %3331 = vmatprep.mubr.msk.f32.mxu0 %vm5161_vm5, %v3733_v4  ;;  %vm5189_vm5 = vcmp.eq.s32.totalorder %v5135_v11, %v4111_v47 }
 0x13c   : > { %3089 = vmatmul.mubr.f32.gmra.mrb[12].mxu1 %v5162_v63  ;;  %3332 = vmatmul.mubr.msk.f32.gmra.mrb[14].mxu0 %vm5163_vm6, %v3733_v4  ;;  %vm5191_vm6 = vcmp.eq.s32.totalorder %v5138_v14, %v4111_v47 }
 0x13d   : > { %3091 = vmatprep.mubr.f32.mxu1 %v5164_v18  ;;  %3334 = vmatprep.mubr.msk.f32.mxu0 %vm5165_vm7, %v3733_v4 }
 0x140   : > { %3092 = vmatmul.mubr.f32.gmra.mrb[14].mxu1 %v5166_v24  ;;  %3335 = vmatmul.mubr.msk.f32.gmra.mrb[16].mxu0 %vm5167_vm9, %v3733_v4 }
 0x141   : > { %3094 = vmatprep.mubr.f32.mxu1 %v5168_v23  ;;  %3337 = vmatprep.mubr.msk.f32.mxu0 %vm5169_vm8, %v3733_v4 }
 0x144   : > { %3095 = vmatmul.mubr.f32.gmra.mrb[16].mxu1 %v5170_v35  ;;  %3338 = vmatmul.mubr.msk.f32.gmra.mrb[18].mxu0 %vm5171_vm13, %v3733_v4 }
 0x145   : > { %3097 = vmatprep.mubr.f32.mxu1 %v5172_v21  ;;  %3340 = vmatprep.mubr.msk.f32.mxu0 %vm5173_vm11, %v3733_v4 }
 0x148   : > { %3098 = vmatmul.mubr.f32.gmra.mrb[18].mxu1 %v5174_v53  ;;  %3341 = vmatmul.mubr.msk.f32.gmra.mrb[20].mxu0 %vm5175_vm10, %v3733_v4 }
 0x149   : > { %3100 = vmatprep.mubr.f32.mxu1 %v5176_v27  ;;  %3343 = vmatprep.mubr.msk.f32.mxu0 %vm5177_vm12, %v3733_v4 }
 0x14c   : > { %3101 = vmatmul.mubr.f32.gmra.mrb[20].mxu1 %v5178_v2  ;;  %3344 = vmatmul.mubr.msk.f32.gmra.mrb[22].mxu0 %vm5179_vm0, %v3733_v4 }
 0x14d   : > { %3103 = vmatprep.mubr.f32.mxu1 %v5180_v7  ;;  %3346 = vmatprep.mubr.msk.f32.mxu0 %vm5181_vm1, %v3733_v4 }
 0x150   : > { %3104 = vmatmul.mubr.f32.gmra.mrb[22].mxu1 %v5182_v6  ;;  %3347 = vmatmul.mubr.msk.f32.gmra.mrb[24].mxu0 %vm5183_vm2, %v3733_v4 }
 0x151   : > { %3106 = vmatprep.mubr.f32.mxu1 %v5184_v3  ;;  %3349 = vmatprep.mubr.msk.f32.mxu0 %vm5185_vm3, %v3733_v4 }
 0x154   : > { %3107 = vmatmul.mubr.f32.gmra.mrb[24].mxu1 %v5186_v28  ;;  %3350 = vmatmul.mubr.msk.f32.gmra.mrb[26].mxu0 %vm5187_vm4, %v3733_v4 }
 0x155   : > { %3109 = vmatprep.mubr.f32.mxu1 %v5188_v39  ;;  %3352 = vmatprep.mubr.msk.f32.mxu0 %vm5189_vm5, %v3733_v4 }
 0x158   : > { %3110 = vmatmul.mubr.f32.gmra.mrb[26].mxu1 %v5190_v41  ;;  %3353 = vmatmul.mubr.msk.f32.gmra.mrb[28].mxu0 %vm5191_vm6, %v3733_v4 }
 0x159   : > { %3112 = vmatprep.mubr.f32.mxu1 %v4499_v34  ;;  %3355 = vmatprep.mubr.msk.f32.mxu0 %vm307_vm15, %v3733_v4 }
 0x15c   : > { %3113 = vmatmul.mubr.f32.gmra.mrb[28].mxu1 %v4497_v61  ;;  %3356 = vmatmul.mubr.msk.f32.gmra.mrb[30].mxu0 %vm308_vm14, %v3733_v4 }
 0x15d   : > { %3115 = vmatprep.mubr.f32.mxu1 %v4523_v16 }
 0x160   : > { %3116 = vmatmul.mubr.f32.gmra.mrb[30].mxu1 %v4521_v37 }
 0x1f3   : > { %v3312_v52 = vpop.f32.mrb[0].mxu0 }
 0x1f4   : > { %v2173_v30 = vpop.f32.mrb[1].mxu0 }
 0x1f7   : > { %v3072_v36 = vpop.f32.mrb[0].mxu1  ;;  %v3315_v45 = vpop.f32.mrb[2].mxu0 }
 0x1f8   : > { %v3550_v47 = vadd.f32 %v3312_v52, %v3072_v36  ;;  %v1227_v0 = vpop.f32.mrb[1].mxu1  ;;  %v2185_v17 = vpop.f32.mrb[3].mxu0 }
 0x1f9   : > { %v3551_v46 = vadd.f32 %v2173_v30, %v1227_v0 }
 0x1fa   : > { %2364 = vst [vmem:[%s4982_s24 + $0x8] sm:$0xff] %v3550_v47 }
 0x1fb   : > { %2363 = vst [vmem:[%s4982_s24] sm:$0xff] %v3551_v46  ;;  %v3075_v32 = vpop.f32.mrb[2].mxu1  ;;  %v3318_v42 = vpop.f32.mrb[4].mxu0 }
 0x1fc   : > { %v3552_v12 = vadd.f32 %v3315_v45, %v3075_v32  ;;  %v1241_v38 = vpop.f32.mrb[3].mxu1  ;;  %v2197_v57 = vpop.f32.mrb[5].mxu0 }
 0x1fd   : > { %v3553_v20 = vadd.f32 %v2185_v17, %v1241_v38 }
 0x1fe   : > { %2366 = vst [vmem:[%s4982_s24 + $0x18] sm:$0xff] %v3552_v12 }
 0x1ff   : > { %2365 = vst [vmem:[%s4982_s24 + $0x10] sm:$0xff] %v3553_v20  ;;  %v3078_v1 = vpop.f32.mrb[4].mxu1  ;;  %v3321_v8 = vpop.f32.mrb[6].mxu0 }
 0x200   : > { %v3554_v54 = vadd.f32 %v3318_v42, %v3078_v1  ;;  %v1255_v15 = vpop.f32.mrb[5].mxu1  ;;  %v2209_v13 = vpop.f32.mrb[7].mxu0 }
 0x201   : > { %v3555_v61 = vadd.f32 %v2197_v57, %v1255_v15 }
 0x202   : > { %2368 = vst [vmem:[%s4982_s24 + $0x28] sm:$0xff] %v3554_v54 }
 0x203   : > { %2367 = vst [vmem:[%s4982_s24 + $0x20] sm:$0xff] %v3555_v61  ;;  %v3081_v34 = vpop.f32.mrb[6].mxu1  ;;  %v3324_v59 = vpop.f32.mrb[8].mxu0 }
 0x204   : > { %v3556_v25 = vadd.f32 %v3321_v8, %v3081_v34  ;;  %v1269_v37 = vpop.f32.mrb[7].mxu1  ;;  %v2221_v16 = vpop.f32.mrb[9].mxu0 }
 0x205   : > { %v3557_v10 = vadd.f32 %v2209_v13, %v1269_v37 }
 0x206   : > { %2370 = vst [vmem:[%s4982_s24 + $0x38] sm:$0xff] %v3556_v25 }
 0x207   : > { %2369 = vst [vmem:[%s4982_s24 + $0x30] sm:$0xff] %v3557_v10  ;;  %v3084_v31 = vpop.f32.mrb[8].mxu1  ;;  %v3327_v9 = vpop.f32.mrb[10].mxu0 }
 0x208   : > { %v3558_v60 = vadd.f32 %v3324_v59, %v3084_v31  ;;  %v1283_v5 = vpop.f32.mrb[9].mxu1  ;;  %v2233_v29 = vpop.f32.mrb[11].mxu0 }
 0x209   : > { %v3559_v4 = vadd.f32 %v2221_v16, %v1283_v5 }
 0x20a   : > { %2372 = vst [vmem:[%s4982_s24 + $0x48] sm:$0xff] %v3558_v60 }
 0x20b   : > { %2371 = vst [vmem:[%s4982_s24 + $0x40] sm:$0xff] %v3559_v4  ;;  %v3087_v22 = vpop.f32.mrb[10].mxu1  ;;  %v3330_v11 = vpop.f32.mrb[12].mxu0 }
 0x20c   : > { %v3560_v14 = vadd.f32 %v3327_v9, %v3087_v22  ;;  %v1297_v19 = vpop.f32.mrb[11].mxu1  ;;  %v2245_v26 = vpop.f32.mrb[13].mxu0 }
 0x20d   : > { %v3561_v33 = vadd.f32 %v2233_v29, %v1297_v19 }
 0x20e   : > { %2374 = vst [vmem:[%s4982_s24 + $0x58] sm:$0xff] %v3560_v14 }
 0x20f   : > { %2373 = vst [vmem:[%s4982_s24 + $0x50] sm:$0xff] %v3561_v33  ;;  %v3090_v40 = vpop.f32.mrb[12].mxu1  ;;  %v3333_v49 = vpop.f32.mrb[14].mxu0 }
 0x210   : > { %v3562_v58 = vadd.f32 %v3330_v11, %v3090_v40  ;;  %v1311_v43 = vpop.f32.mrb[13].mxu1  ;;  %v2257_v44 = vpop.f32.mrb[15].mxu0 }
 0x211   : > { %v3563_v50 = vadd.f32 %v2245_v26, %v1311_v43 }
 0x212   : > { %2376 = vst [vmem:[%s4982_s24 + $0x68] sm:$0xff] %v3562_v58 }
 0x213   : > { %2375 = vst [vmem:[%s4982_s24 + $0x60] sm:$0xff] %v3563_v50  ;;  %v3093_v51 = vpop.f32.mrb[14].mxu1  ;;  %v3336_v55 = vpop.f32.mrb[16].mxu0 }
 0x214   : > { %v3564_v56 = vadd.f32 %v3333_v49, %v3093_v51  ;;  %v1325_v62 = vpop.f32.mrb[15].mxu1  ;;  %v2269_v48 = vpop.f32.mrb[17].mxu0 }
 0x215   : > { %v3565_v63 = vadd.f32 %v2257_v44, %v1325_v62 }
 0x216   : > { %2378 = vst [vmem:[%s4982_s24 + $0x78] sm:$0xff] %v3564_v56 }
 0x217   : > { %2377 = vst [vmem:[%s4982_s24 + $0x70] sm:$0xff] %v3565_v63  ;;  %v3096_v18 = vpop.f32.mrb[16].mxu1  ;;  %v3339_v24 = vpop.f32.mrb[18].mxu0 }
 0x218   : > { %v3566_v23 = vadd.f32 %v3336_v55, %v3096_v18  ;;  %v1339_v35 = vpop.f32.mrb[17].mxu1  ;;  %v2281_v21 = vpop.f32.mrb[19].mxu0 }
 0x219   : > { %v3567_v53 = vadd.f32 %v2269_v48, %v1339_v35 }
 0x21a   : > { %2380 = vst [vmem:[%s4982_s24 + $0x88] sm:$0xff] %v3566_v23 }
 0x21b   : > { %2379 = vst [vmem:[%s4982_s24 + $0x80] sm:$0xff] %v3567_v53  ;;  %v3099_v27 = vpop.f32.mrb[18].mxu1  ;;  %v3342_v2 = vpop.f32.mrb[20].mxu0 }
 0x21c   : > { %v3568_v7 = vadd.f32 %v3339_v24, %v3099_v27  ;;  %v1353_v6 = vpop.f32.mrb[19].mxu1  ;;  %v2293_v3 = vpop.f32.mrb[21].mxu0 }
 0x21d   : > { %v3569_v28 = vadd.f32 %v2281_v21, %v1353_v6 }
 0x21e   : > { %2382 = vst [vmem:[%s4982_s24 + $0x98] sm:$0xff] %v3568_v7 }
 0x21f   : > { %2381 = vst [vmem:[%s4982_s24 + $0x90] sm:$0xff] %v3569_v28  ;;  %v3102_v39 = vpop.f32.mrb[20].mxu1  ;;  %v3345_v41 = vpop.f32.mrb[22].mxu0 }
 0x220   : > { %v3570_v52 = vadd.f32 %v3342_v2, %v3102_v39  ;;  %v1367_v30 = vpop.f32.mrb[21].mxu1  ;;  %v2305_v36 = vpop.f32.mrb[23].mxu0 }
 0x221   : > { %v3571_v45 = vadd.f32 %v2293_v3, %v1367_v30 }
 0x222   : > { %2384 = vst [vmem:[%s4982_s24 + $0xa8] sm:$0xff] %v3570_v52 }
 0x223   : > { %2383 = vst [vmem:[%s4982_s24 + $0xa0] sm:$0xff] %v3571_v45  ;;  %v3105_v47 = vpop.f32.mrb[22].mxu1  ;;  %v3348_v0 = vpop.f32.mrb[24].mxu0 }
 0x224   : > { %v3572_v17 = vadd.f32 %v3345_v41, %v3105_v47  ;;  %v1381_v46 = vpop.f32.mrb[23].mxu1  ;;  %v2317_v32 = vpop.f32.mrb[25].mxu0 }
 0x225   : > { %v3573_v42 = vadd.f32 %v2305_v36, %v1381_v46 }
 0x226   : > { %2386 = vst [vmem:[%s4982_s24 + $0xb8] sm:$0xff] %v3572_v17 }
 0x227   : > { %2385 = vst [vmem:[%s4982_s24 + $0xb0] sm:$0xff] %v3573_v42  ;;  %v3108_v12 = vpop.f32.mrb[24].mxu1  ;;  %v3351_v38 = vpop.f32.mrb[26].mxu0 }
 0x228   : > { %v3574_v57 = vadd.f32 %v3348_v0, %v3108_v12  ;;  %v1395_v20 = vpop.f32.mrb[25].mxu1  ;;  %v2329_v1 = vpop.f32.mrb[27].mxu0 }
 0x229   : > { %v3575_v8 = vadd.f32 %v2317_v32, %v1395_v20 }
 0x22a   : > { %2388 = vst [vmem:[%s4982_s24 + $0xc8] sm:$0xff] %v3574_v57 }
 0x22b   : > { %2387 = vst [vmem:[%s4982_s24 + $0xc0] sm:$0xff] %v3575_v8  ;;  %v3111_v54 = vpop.f32.mrb[26].mxu1  ;;  %v3354_v15 = vpop.f32.mrb[28].mxu0 }
 0x22c   : > { %v3576_v13 = vadd.f32 %v3351_v38, %v3111_v54  ;;  %v1409_v61 = vpop.f32.mrb[27].mxu1  ;;  %v2341_v34 = vpop.f32.mrb[29].mxu0 }
 0x22d   : > { %v3577_v59 = vadd.f32 %v2329_v1, %v1409_v61 }
 0x22e   : > { %2390 = vst [vmem:[%s4982_s24 + $0xd8] sm:$0xff] %v3576_v13 }
 0x22f   : > { %2389 = vst [vmem:[%s4982_s24 + $0xd0] sm:$0xff] %v3577_v59  ;;  %v3114_v25 = vpop.f32.mrb[28].mxu1  ;;  %v3357_v37 = vpop.f32.mrb[30].mxu0 }
 0x230   : > { %v3578_v16 = vadd.f32 %v3354_v15, %v3114_v25  ;;  %v1423_v10 = vpop.f32.mrb[29].mxu1  ;;  %v2353_v31 = vpop.f32.mrb[31].mxu0 }
 0x231   : > { %v3579_v9 = vadd.f32 %v2341_v34, %v1423_v10 }
 0x232   : > { %2392 = vst [vmem:[%s4982_s24 + $0xe8] sm:$0xff] %v3578_v16 }
 0x233   : > { %2391 = vst [vmem:[%s4982_s24 + $0xe0] sm:$0xff] %v3579_v9  ;;  %v3117_v60 = vpop.f32.mrb[30].mxu1 }
 0x234   : > { %v3580_v5 = vadd.f32 %v3357_v37, %v3117_v60  ;;  %v1437_v29 = vpop.f32.mrb[31].mxu1 }
 0x235   : > { %v3581_v4 = vadd.f32 %v2353_v31, %v1437_v29 }
 0x236   : > { %2394 = vst [vmem:[%s4982_s24 + $0xf8] sm:$0xff] %v3580_v5 }
 0x237   : > { %2393 = vst [vmem:[%s4982_s24 + $0xf0] sm:$0xff] %v3581_v4 }
 0x238 PF: > { %s12_s9 = sadd.s32 1, %s3729_s9  }
 0x239   : > { %p9_p4 = scmp.ge.s32.totalorder %s12_s9, 4  }
 0x23b   :  { %11 = sbr.rel (!%p9_p4) target bundleno = 1 (0x1), region = 58 }

</bundles_post_ra>
